<compile_context>
chip_gen: v6e
topology: v6e:2x2x1
jax: 0.10.0
libtpu: 0.0.40
codegen_flags: <defaults>
</compile_context>

<pallas_src>
import functools

import jax
import jax.numpy as jnp
from jax.experimental import pallas as pl
from jax.experimental.pallas import tpu as pltpu

# "constants" from the original module.
NUM_ACTIONS = 64             # constants.num_actions
NUM_DISCARD_CARDS = 8        # constants.num_discard_pile_cards
HAND_DIM = 13 * 4 * 13       # 676, fixed by the module
CARD_DIM = 4 * 13            # 52, GRU input size
HIDDEN = NUM_ACTIONS * 2     # 128, GRU hidden / fc1 output size
ACT_PAD = 128                # NUM_ACTIONS padded to a full lane tile


def _round_up(x, m):
    return ((x + m - 1) // m) * m


def jinbeer_kernel(maxlen_ref,                     # SMEM (num_blocks,) int32 (prefetch)
                   hand_ref, seq_ref, len_ref,     # (TB,676)bf16, (T,TB,52)bf16, (TB,1)i32
                   w1t_ref, b1_ref,                # (676,128)bf16, (1,128)f32
                   w2t_ref, b2_ref,                # (128,128)bf16, (1,128)f32
                   wi_ref, bi_ref,                 # (52,384)bf16,  (1,384)f32 (b_hh r/z folded)
                   wh_ref, bhn_ref,                # (128,384)bf16, (1,128)f32 (b_hh n only)
                   wdt_ref, bd_ref,                # (128,128)bf16, (1,128)f32
                   y_ref):                         # (TB,128) f32
    TB = hand_ref.shape[0]
    T = seq_ref.shape[0]
    C = seq_ref.shape[2]
    H = wh_ref.shape[0]

    # ---- hand MLP: relu(fc1) -> fc2  (bf16 MXU operands, f32 accumulate) ----
    h1 = jnp.dot(hand_ref[...], w1t_ref[...],
                 preferred_element_type=jnp.float32) + b1_ref[...]
    h1 = jnp.maximum(h1, 0.0)
    y_hand = jnp.dot(h1.astype(jnp.bfloat16), w2t_ref[...],
                     preferred_element_type=jnp.float32) + b2_ref[...]
    y_ref[...] = y_hand                           # hand-only result (lane-dense store)

    # ---- GRU over discard-pile sequence, skipped per-block when all piles empty
    @pl.when(maxlen_ref[pl.program_id(0)] > 0)
    def _gru_and_blend():
        lengths = len_ref[...]                                    # (TB, 1) int32
        len_b = jnp.broadcast_to(lengths, (TB, H))                # hoisted: one broadcast

        # Hoisted input projection: one big matmul over all T steps at once.
        seq2d = seq_ref[...].reshape(T * TB, C)                   # TB % 16 == 0 -> free merge
        xproj = jnp.dot(seq2d, wi_ref[...],
                        preferred_element_type=jnp.float32) + bi_ref[...]   # (T*TB, 3H)

        wh = wh_ref[...]
        bhn = bhn_ref[...]
        h = jnp.zeros((TB, H), dtype=jnp.float32)
        last_h = h

        # Fully unrolled recurrence (T static): one fused bf16 hidden matmul/step.
        for t in range(T):
            xp = xproj[t * TB:(t + 1) * TB, :]                              # (TB, 3H)
            hp = jnp.dot(h.astype(jnp.bfloat16), wh,
                         preferred_element_type=jnp.float32)                # (TB, 3H)
            r = jax.nn.sigmoid(xp[:, 0:H] + hp[:, 0:H])
            z = jax.nn.sigmoid(xp[:, H:2 * H] + hp[:, H:2 * H])
            n = jnp.tanh(xp[:, 2 * H:3 * H] + r * (hp[:, 2 * H:3 * H] + bhn))
            h = n + z * (h - n)                                   # == (1-z)*n + z*h
            # Hidden state at the last *valid* step of each row
            # (== pack_padded_sequence + last unpacked element).
            last_h = jnp.where(len_b == (t + 1), h, last_h)

        d = jnp.dot(last_h.astype(jnp.bfloat16), wdt_ref[...],
                    preferred_element_type=jnp.float32) + bd_ref[...]       # (TB, A_pad)
        y_ref[...] = jnp.where(len_b > 0, 0.3 * y_hand + 0.7 * d, y_hand)


def init_params(key):
    """Deterministic synthetic parameters with PyTorch-equivalent shapes."""
    ks = jax.random.split(key, 10)
    s = 0.05
    p = {}
    # hand_fc1: Linear(676 -> 2A)
    p["w1"] = s * jax.random.normal(ks[0], (HIDDEN, HAND_DIM), jnp.float32)
    p["b1"] = s * jax.random.normal(ks[1], (HIDDEN,), jnp.float32)
    # hand_fc2: Linear(2A -> A)
    p["w2"] = s * jax.random.normal(ks[2], (NUM_ACTIONS, HIDDEN), jnp.float32)
    p["b2"] = s * jax.random.normal(ks[3], (NUM_ACTIONS,), jnp.float32)
    # discard_pile_gru: GRU(52 -> 2A), PyTorch (r, z, n) gate order.
    p["w_ih"] = s * jax.random.normal(ks[4], (3 * HIDDEN, CARD_DIM), jnp.float32)
    p["w_hh"] = s * jax.random.normal(ks[5], (3 * HIDDEN, HIDDEN), jnp.float32)
    p["b_ih"] = s * jax.random.normal(ks[6], (3 * HIDDEN,), jnp.float32)
    p["b_hh"] = s * jax.random.normal(ks[7], (3 * HIDDEN,), jnp.float32)
    # discard_pile_fc1: Linear(2A -> A)
    p["wd"] = s * jax.random.normal(ks[8], (NUM_ACTIONS, HIDDEN), jnp.float32)
    p["bd"] = s * jax.random.normal(ks[9], (NUM_ACTIONS,), jnp.float32)
    return p


@functools.partial(jax.jit, static_argnames=())
def jinbeer_forward(hand_cards, discard_pile, params):
    B = hand_cards.shape[0]
    T = discard_pile.shape[1]
    H = HIDDEN

    # Batch tiling: >= 2 blocks whenever the batch allows (v7x megacore split),
    # capped at 256 rows/block, rounded to a bf16 sublane multiple (16).
    TB = max(16, min(256, _round_up(-(-B // 2), 16)))
    B_pad = _round_up(B, TB)
    num_blocks = B_pad // TB

    # Hand: .view(B, -1), pad only the batch dim (no K pad -> no 676->768 HBM copy).
    hand_flat = hand_cards.reshape(B, HAND_DIM).astype(jnp.float32)
    hand_flat = jnp.pad(hand_flat, ((0, B_pad - B), (0, 0))).astype(jnp.bfloat16)

    # Discard pile: (B, T, 4, 13) -> (B, T, 52); lengths as in DiscardPile.__init__
    # (full pile with no empty slot keeps length 0, exactly like the reference loop).
    seq = discard_pile.reshape(B, T, CARD_DIM).astype(jnp.float32)
    is_zero = seq.sum(axis=-1) == 0
    lengths = jnp.where(jnp.any(is_zero, axis=1),
                        jnp.argmax(is_zero, axis=1), 0).astype(jnp.int32)     # (B,)
    lengths_pad = jnp.pad(lengths, (0, B_pad - B))
    lengths_col = lengths_pad.reshape(B_pad, 1)
    # Per-block max length -> per-block GRU gating via scalar prefetch.
    blk_maxlen = lengths_pad.reshape(num_blocks, TB).max(axis=1).astype(jnp.int32)
    # Time-major bf16 sequence (tiny tensor; wrapper transpose cost is negligible).
    seq_tbf = jnp.transpose(jnp.pad(seq, ((0, B_pad - B), (0, 0), (0, 0))),
                            (1, 0, 2)).astype(jnp.bfloat16)                   # (T, B_pad, 52)

    # Weights: pre-transposed, gate-fused (r|z|n), bf16 for the MXU, f32 biases.
    w1t = params["w1"].T.astype(jnp.bfloat16)                                 # (676, 128)
    b1 = params["b1"].reshape(1, H)
    w2t = jnp.pad(params["w2"].T,
                  ((0, 0), (0, ACT_PAD - NUM_ACTIONS))).astype(jnp.bfloat16)  # (128, 128)
    b2 = jnp.pad(params["b2"], (0, ACT_PAD - NUM_ACTIONS)).reshape(1, ACT_PAD)
    wi_cat = params["w_ih"].T.astype(jnp.bfloat16)                            # (52, 384)
    wh_cat = params["w_hh"].T.astype(jnp.bfloat16)                            # (128, 384)
    b_ih, b_hh = params["b_ih"], params["b_hh"]
    bi_cat = b_ih.at[:2 * H].add(b_hh[:2 * H]).reshape(1, 3 * H)              # fold b_hh r/z
    bhn = b_hh[2 * H:].reshape(1, H)                                          # b_hh n only
    wdt = jnp.pad(params["wd"].T,
                  ((0, 0), (0, ACT_PAD - NUM_ACTIONS))).astype(jnp.bfloat16)  # (128, 128)
    bd = jnp.pad(params["bd"], (0, ACT_PAD - NUM_ACTIONS)).reshape(1, ACT_PAD)

    # index_maps receive (grid_i, prefetch_ref) positionally.
    bmap = lambda i, ml: (i, 0)        # batch-tiled 2-D operands
    smap = lambda i, ml: (0, i, 0)     # time-major sequence
    wmap = lambda i, ml: (0, 0)        # weights: same block every step -> resident

    grid_spec = pltpu.PrefetchScalarGridSpec(
        num_scalar_prefetch=1,
        grid=(num_blocks,),
        in_specs=[
            pl.BlockSpec((TB, HAND_DIM), bmap),          # hand (full 676 lane extent)
            pl.BlockSpec((T, TB, CARD_DIM), smap),       # seq (time-major)
            pl.BlockSpec((TB, 1), bmap),                 # lengths
            pl.BlockSpec((HAND_DIM, H), wmap),           # w1t
            pl.BlockSpec((1, H), wmap),                  # b1
            pl.BlockSpec((H, ACT_PAD), wmap),            # w2t
            pl.BlockSpec((1, ACT_PAD), wmap),            # b2
            pl.BlockSpec((CARD_DIM, 3 * H), wmap),       # wi_cat
            pl.BlockSpec((1, 3 * H), wmap),              # bi_cat (r/z hidden biases folded)
            pl.BlockSpec((H, 3 * H), wmap),              # wh_cat
            pl.BlockSpec((1, H), wmap),                  # bhn
            pl.BlockSpec((H, ACT_PAD), wmap),            # wdt
            pl.BlockSpec((1, ACT_PAD), wmap),            # bd
        ],
        out_specs=pl.BlockSpec((TB, ACT_PAD), bmap),
    )

    y_pad = pl.pallas_call(
        jinbeer_kernel,
        out_shape=jax.ShapeDtypeStruct((B_pad, ACT_PAD), jnp.float32),
        grid_spec=grid_spec,
        compiler_params=pltpu.CompilerParams(
            dimension_semantics=("parallel",),
            vmem_limit_bytes=64 * 1024 * 1024),
    )(blk_maxlen, hand_flat, seq_tbf, lengths_col,
      w1t, b1, w2t, b2, wi_cat, bi_cat, wh_cat, bhn, wdt, bd)

    return y_pad[:B, :NUM_ACTIONS]


if __name__ == "__main__":
    key = jax.random.PRNGKey(0)
    k_param, k_hand, k_disc = jax.random.split(key, 3)

    params = init_params(k_param)

    B = 2
    # Hand: (B, 13, 4, 13) one-hot-ish binary cards.
    hand = (jax.random.uniform(k_hand, (B, 13, 4, 13)) > 0.9).astype(jnp.float32)

    # Discard pile: (B, NUM_DISCARD_CARDS, 4, 13).
    #   batch 0: 3 non-empty card slices followed by zeros -> length 3 (GRU path)
    #   batch 1: all zeros                                  -> length 0 (hand-only path)
    disc = (jax.random.uniform(k_disc, (B, NUM_DISCARD_CARDS, 4, 13)) > 0.8).astype(jnp.float32)
    valid = jnp.zeros((B, NUM_DISCARD_CARDS), jnp.float32).at[0, :3].set(1.0)
    disc = disc.at[:, :, 0, 0].set(1.0)          # ensure "valid" slices are non-empty
    disc = disc * valid[:, :, None, None]

    y = jinbeer_forward(hand, disc, params)
    jax.block_until_ready(y)
    assert y.shape == (B, NUM_ACTIONS)
    assert bool(jnp.all(jnp.isfinite(y)))
    print("KERNEL_OK")
</pallas_src>

<mosaic_0001>
module attributes {stable_mosaic.version = 11 : i64} {
  func.func @jinbeer_kernel(%arg0: i32, %arg1: memref<1xi32, #tpu.memory_space<smem>>, %arg2: memref<16x676xbf16, #tpu.memory_space<vmem>>, %arg3: memref<8x16x52xbf16, #tpu.memory_space<vmem>>, %arg4: memref<16x1xi32, #tpu.memory_space<vmem>>, %arg5: memref<676x128xbf16, #tpu.memory_space<vmem>>, %arg6: memref<1x128xf32, #tpu.memory_space<vmem>>, %arg7: memref<128x128xbf16, #tpu.memory_space<vmem>>, %arg8: memref<1x128xf32, #tpu.memory_space<vmem>>, %arg9: memref<52x384xbf16, #tpu.memory_space<vmem>>, %arg10: memref<1x384xf32, #tpu.memory_space<vmem>>, %arg11: memref<128x384xbf16, #tpu.memory_space<vmem>>, %arg12: memref<1x128xf32, #tpu.memory_space<vmem>>, %arg13: memref<128x128xbf16, #tpu.memory_space<vmem>>, %arg14: memref<1x128xf32, #tpu.memory_space<vmem>>, %arg15: memref<16x128xf32, #tpu.memory_space<vmem>>) attributes {dimension_semantics = [#tpu.dimension_semantics<parallel>], iteration_bounds = array<i64: 1>, scalar_prefetch = 1 : i64, scratch_operands = 0 : i64, tpu.core_type = #tpu.core_type<tc>, window_params = [{transform_indices = @transform_0, window_bounds = array<i64: 16, 676>}, {transform_indices = @transform_1, window_bounds = array<i64: 8, 16, 52>}, {transform_indices = @transform_2, window_bounds = array<i64: 16, 1>}, {pipeline_mode = #tpu.pipeline_mode<synchronous>, transform_indices = @transform_3, window_bounds = array<i64: 676, 128>}, {pipeline_mode = #tpu.pipeline_mode<synchronous>, transform_indices = @transform_4, window_bounds = array<i64: 1, 128>}, {pipeline_mode = #tpu.pipeline_mode<synchronous>, transform_indices = @transform_5, window_bounds = array<i64: 128, 128>}, {pipeline_mode = #tpu.pipeline_mode<synchronous>, transform_indices = @transform_6, window_bounds = array<i64: 1, 128>}, {pipeline_mode = #tpu.pipeline_mode<synchronous>, transform_indices = @transform_7, window_bounds = array<i64: 52, 384>}, {pipeline_mode = #tpu.pipeline_mode<synchronous>, transform_indices = @transform_8, window_bounds = array<i64: 1, 384>}, {pipeline_mode = #tpu.pipeline_mode<synchronous>, transform_indices = @transform_9, window_bounds = array<i64: 128, 384>}, {pipeline_mode = #tpu.pipeline_mode<synchronous>, transform_indices = @transform_10, window_bounds = array<i64: 1, 128>}, {pipeline_mode = #tpu.pipeline_mode<synchronous>, transform_indices = @transform_11, window_bounds = array<i64: 128, 128>}, {pipeline_mode = #tpu.pipeline_mode<synchronous>, transform_indices = @transform_12, window_bounds = array<i64: 1, 128>}, {transform_indices = @transform_13, window_bounds = array<i64: 16, 128>}]} {
    %c0 = arith.constant 0 : index
    %c0_0 = arith.constant 0 : index
    %0 = vector.load %arg2[%c0, %c0_0] : memref<16x676xbf16, #tpu.memory_space<vmem>>, vector<16x676xbf16>
    %c0_1 = arith.constant 0 : index
    %c0_2 = arith.constant 0 : index
    %1 = vector.load %arg5[%c0_1, %c0_2] : memref<676x128xbf16, #tpu.memory_space<vmem>>, vector<676x128xbf16>
    %cst = arith.constant dense<0.000000e+00> : vector<16x128xf32>
    %2 = tpu.matmul %0, %1, %cst {dimension_numbers = #tpu.dot_dimension_numbers<[1], [0], [0], [1], [0, 0, 1, 1], [], []>} : vector<16x676xbf16>, vector<676x128xbf16>, vector<16x128xf32> -> vector<16x128xf32>
    %c0_3 = arith.constant 0 : index
    %c0_4 = arith.constant 0 : index
    %3 = vector.load %arg6[%c0_3, %c0_4] : memref<1x128xf32, #tpu.memory_space<vmem>>, vector<1x128xf32>
    %4 = vector.broadcast %3 : vector<1x128xf32> to vector<16x128xf32>
    %5 = arith.addf %2, %4 : vector<16x128xf32>
    %cst_5 = arith.constant 0.000000e+00 : f32
    %6 = vector.broadcast %cst_5 : f32 to vector<16x128xf32>
    %7 = arith.maximumf %5, %6 : vector<16x128xf32>
    %8 = arith.truncf %7 : vector<16x128xf32> to vector<16x128xbf16>
    %c0_6 = arith.constant 0 : index
    %c0_7 = arith.constant 0 : index
    %9 = vector.load %arg7[%c0_6, %c0_7] : memref<128x128xbf16, #tpu.memory_space<vmem>>, vector<128x128xbf16>
    %cst_8 = arith.constant dense<0.000000e+00> : vector<16x128xf32>
    %10 = tpu.matmul %8, %9, %cst_8 {dimension_numbers = #tpu.dot_dimension_numbers<[1], [0], [0], [1], [0, 0, 1, 1], [], []>} : vector<16x128xbf16>, vector<128x128xbf16>, vector<16x128xf32> -> vector<16x128xf32>
    %c0_9 = arith.constant 0 : index
    %c0_10 = arith.constant 0 : index
    %11 = vector.load %arg8[%c0_9, %c0_10] : memref<1x128xf32, #tpu.memory_space<vmem>>, vector<1x128xf32>
    %12 = vector.broadcast %11 : vector<1x128xf32> to vector<16x128xf32>
    %13 = arith.addf %10, %12 : vector<16x128xf32>
    %c0_11 = arith.constant 0 : index
    %c0_12 = arith.constant 0 : index
    %14 = vector.load %arg15[%c0_11, %c0_12] : memref<16x128xf32, #tpu.memory_space<vmem>>, vector<16x128xf32>
    tpu.vector_store %arg15[%c0_11, %c0_12], %13 {strides = array<i32>} : memref<16x128xf32, #tpu.memory_space<vmem>>, vector<16x128xf32>,
    %15 = arith.index_cast %arg0 : i32 to index
    %16 = memref.load %arg1[%15] : memref<1xi32, #tpu.memory_space<smem>>
    %c0_i32 = arith.constant 0 : i32
    %17 = arith.cmpi sgt, %16, %c0_i32 : i32
    %18 = arith.extui %17 : i1 to i32
    %c0_i32_13 = arith.constant 0 : i32
    %19 = arith.cmpi ne, %18, %c0_i32_13 : i32
    scf.if %19 {
      %c0_14 = arith.constant 0 : index
      %c0_15 = arith.constant 0 : index
      %20 = vector.load %arg4[%c0_14, %c0_15] : memref<16x1xi32, #tpu.memory_space<vmem>>, vector<16x1xi32>
      %21 = vector.shape_cast %20 : vector<16x1xi32> to vector<16x1xi32>
      %22 = vector.broadcast %21 : vector<16x1xi32> to vector<16x128xi32>
      %c0_16 = arith.constant 0 : index
      %c0_17 = arith.constant 0 : index
      %c0_18 = arith.constant 0 : index
      %23 = vector.load %arg3[%c0_16, %c0_17, %c0_18] : memref<8x16x52xbf16, #tpu.memory_space<vmem>>, vector<8x16x52xbf16>
      %24 = vector.shape_cast %23 : vector<8x16x52xbf16> to vector<128x52xbf16>
      %c0_19 = arith.constant 0 : index
      %c0_20 = arith.constant 0 : index
      %25 = vector.load %arg9[%c0_19, %c0_20] : memref<52x384xbf16, #tpu.memory_space<vmem>>, vector<52x384xbf16>
      %cst_21 = arith.constant dense<0.000000e+00> : vector<128x384xf32>
      %26 = tpu.matmul %24, %25, %cst_21 {dimension_numbers = #tpu.dot_dimension_numbers<[1], [0], [0], [1], [0, 0, 1, 1], [], []>} : vector<128x52xbf16>, vector<52x384xbf16>, vector<128x384xf32> -> vector<128x384xf32>
      %c0_22 = arith.constant 0 : index
      %c0_23 = arith.constant 0 : index
      %27 = vector.load %arg10[%c0_22, %c0_23] : memref<1x384xf32, #tpu.memory_space<vmem>>, vector<1x384xf32>
      %28 = vector.broadcast %27 : vector<1x384xf32> to vector<128x384xf32>
      %29 = arith.addf %26, %28 : vector<128x384xf32>
      %c0_24 = arith.constant 0 : index
      %c0_25 = arith.constant 0 : index
      %30 = vector.load %arg11[%c0_24, %c0_25] : memref<128x384xbf16, #tpu.memory_space<vmem>>, vector<128x384xbf16>
      %c0_26 = arith.constant 0 : index
      %c0_27 = arith.constant 0 : index
      %31 = vector.load %arg12[%c0_26, %c0_27] : memref<1x128xf32, #tpu.memory_space<vmem>>, vector<1x128xf32>
      %cst_28 = arith.constant 0.000000e+00 : f32
      %32 = vector.broadcast %cst_28 : f32 to vector<16x128xf32>
      %33 = vector.extract_strided_slice %29 {offsets = [0, 0], sizes = [16, 384], strides = [1, 1]} : vector<128x384xf32> to vector<16x384xf32>
      %34 = arith.truncf %32 : vector<16x128xf32> to vector<16x128xbf16>
      %cst_29 = arith.constant dense<0.000000e+00> : vector<16x384xf32>
      %35 = tpu.matmul %34, %30, %cst_29 {dimension_numbers = #tpu.dot_dimension_numbers<[1], [0], [0], [1], [0, 0, 1, 1], [], []>} : vector<16x128xbf16>, vector<128x384xbf16>, vector<16x384xf32> -> vector<16x384xf32>
      %36 = vector.extract_strided_slice %33 {offsets = [0, 0], sizes = [16, 128], strides = [1, 1]} : vector<16x384xf32> to vector<16x128xf32>
      %37 = vector.extract_strided_slice %35 {offsets = [0, 0], sizes = [16, 128], strides = [1, 1]} : vector<16x384xf32> to vector<16x128xf32>
      %38 = arith.addf %36, %37 : vector<16x128xf32>
      %39 = arith.negf %38 : vector<16x128xf32>
      %40 = math.exp %39 : vector<16x128xf32>
      %cst_30 = arith.constant 1.000000e+00 : f32
      %41 = vector.broadcast %cst_30 : f32 to vector<16x128xf32>
      %42 = arith.addf %41, %40 : vector<16x128xf32>
      %43 = arith.divf %41, %42 : vector<16x128xf32>
      %44 = vector.extract_strided_slice %33 {offsets = [0, 128], sizes = [16, 128], strides = [1, 1]} : vector<16x384xf32> to vector<16x128xf32>
      %45 = vector.extract_strided_slice %35 {offsets = [0, 128], sizes = [16, 128], strides = [1, 1]} : vector<16x384xf32> to vector<16x128xf32>
      %46 = arith.addf %44, %45 : vector<16x128xf32>
      %47 = arith.negf %46 : vector<16x128xf32>
      %48 = math.exp %47 : vector<16x128xf32>
      %cst_31 = arith.constant 1.000000e+00 : f32
      %49 = vector.broadcast %cst_31 : f32 to vector<16x128xf32>
      %50 = arith.addf %49, %48 : vector<16x128xf32>
      %51 = arith.divf %49, %50 : vector<16x128xf32>
      %52 = vector.extract_strided_slice %33 {offsets = [0, 256], sizes = [16, 128], strides = [1, 1]} : vector<16x384xf32> to vector<16x128xf32>
      %53 = vector.extract_strided_slice %35 {offsets = [0, 256], sizes = [16, 128], strides = [1, 1]} : vector<16x384xf32> to vector<16x128xf32>
      %54 = vector.broadcast %31 : vector<1x128xf32> to vector<16x128xf32>
      %55 = arith.addf %53, %54 : vector<16x128xf32>
      %56 = arith.mulf %43, %55 : vector<16x128xf32>
      %57 = arith.addf %52, %56 : vector<16x128xf32>
      %58 = math.tanh %57 : vector<16x128xf32>
      %59 = arith.subf %32, %58 : vector<16x128xf32>
      %60 = arith.mulf %51, %59 : vector<16x128xf32>
      %61 = arith.addf %58, %60 : vector<16x128xf32>
      %c1_i32 = arith.constant 1 : i32
      %62 = vector.broadcast %c1_i32 : i32 to vector<16x128xi32>
      %63 = arith.cmpi eq, %22, %62 : vector<16x128xi32>
      %64 = arith.select %63, %61, %32 : vector<16x128xi1>, vector<16x128xf32>
      %65 = vector.extract_strided_slice %29 {offsets = [16, 0], sizes = [16, 384], strides = [1, 1]} : vector<128x384xf32> to vector<16x384xf32>
      %66 = arith.truncf %61 : vector<16x128xf32> to vector<16x128xbf16>
      %cst_32 = arith.constant dense<0.000000e+00> : vector<16x384xf32>
      %67 = tpu.matmul %66, %30, %cst_32 {dimension_numbers = #tpu.dot_dimension_numbers<[1], [0], [0], [1], [0, 0, 1, 1], [], []>} : vector<16x128xbf16>, vector<128x384xbf16>, vector<16x384xf32> -> vector<16x384xf32>
      %68 = vector.extract_strided_slice %65 {offsets = [0, 0], sizes = [16, 128], strides = [1, 1]} : vector<16x384xf32> to vector<16x128xf32>
      %69 = vector.extract_strided_slice %67 {offsets = [0, 0], sizes = [16, 128], strides = [1, 1]} : vector<16x384xf32> to vector<16x128xf32>
      %70 = arith.addf %68, %69 : vector<16x128xf32>
      %71 = arith.negf %70 : vector<16x128xf32>
      %72 = math.exp %71 : vector<16x128xf32>
      %cst_33 = arith.constant 1.000000e+00 : f32
      %73 = vector.broadcast %cst_33 : f32 to vector<16x128xf32>
      %74 = arith.addf %73, %72 : vector<16x128xf32>
      %75 = arith.divf %73, %74 : vector<16x128xf32>
      %76 = vector.extract_strided_slice %65 {offsets = [0, 128], sizes = [16, 128], strides = [1, 1]} : vector<16x384xf32> to vector<16x128xf32>
      %77 = vector.extract_strided_slice %67 {offsets = [0, 128], sizes = [16, 128], strides = [1, 1]} : vector<16x384xf32> to vector<16x128xf32>
      %78 = arith.addf %76, %77 : vector<16x128xf32>
      %79 = arith.negf %78 : vector<16x128xf32>
      %80 = math.exp %79 : vector<16x128xf32>
      %cst_34 = arith.constant 1.000000e+00 : f32
      %81 = vector.broadcast %cst_34 : f32 to vector<16x128xf32>
      %82 = arith.addf %81, %80 : vector<16x128xf32>
      %83 = arith.divf %81, %82 : vector<16x128xf32>
      %84 = vector.extract_strided_slice %65 {offsets = [0, 256], sizes = [16, 128], strides = [1, 1]} : vector<16x384xf32> to vector<16x128xf32>
      %85 = vector.extract_strided_slice %67 {offsets = [0, 256], sizes = [16, 128], strides = [1, 1]} : vector<16x384xf32> to vector<16x128xf32>
      %86 = vector.broadcast %31 : vector<1x128xf32> to vector<16x128xf32>
      %87 = arith.addf %85, %86 : vector<16x128xf32>
      %88 = arith.mulf %75, %87 : vector<16x128xf32>
      %89 = arith.addf %84, %88 : vector<16x128xf32>
      %90 = math.tanh %89 : vector<16x128xf32>
      %91 = arith.subf %61, %90 : vector<16x128xf32>
      %92 = arith.mulf %83, %91 : vector<16x128xf32>
      %93 = arith.addf %90, %92 : vector<16x128xf32>
      %c2_i32 = arith.constant 2 : i32
      %94 = vector.broadcast %c2_i32 : i32 to vector<16x128xi32>
      %95 = arith.cmpi eq, %22, %94 : vector<16x128xi32>
      %96 = arith.select %95, %93, %64 : vector<16x128xi1>, vector<16x128xf32>
      %97 = vector.extract_strided_slice %29 {offsets = [32, 0], sizes = [16, 384], strides = [1, 1]} : vector<128x384xf32> to vector<16x384xf32>
      %98 = arith.truncf %93 : vector<16x128xf32> to vector<16x128xbf16>
      %cst_35 = arith.constant dense<0.000000e+00> : vector<16x384xf32>
      %99 = tpu.matmul %98, %30, %cst_35 {dimension_numbers = #tpu.dot_dimension_numbers<[1], [0], [0], [1], [0, 0, 1, 1], [], []>} : vector<16x128xbf16>, vector<128x384xbf16>, vector<16x384xf32> -> vector<16x384xf32>
      %100 = vector.extract_strided_slice %97 {offsets = [0, 0], sizes = [16, 128], strides = [1, 1]} : vector<16x384xf32> to vector<16x128xf32>
      %101 = vector.extract_strided_slice %99 {offsets = [0, 0], sizes = [16, 128], strides = [1, 1]} : vector<16x384xf32> to vector<16x128xf32>
      %102 = arith.addf %100, %101 : vector<16x128xf32>
      %103 = arith.negf %102 : vector<16x128xf32>
      %104 = math.exp %103 : vector<16x128xf32>
      %cst_36 = arith.constant 1.000000e+00 : f32
      %105 = vector.broadcast %cst_36 : f32 to vector<16x128xf32>
      %106 = arith.addf %105, %104 : vector<16x128xf32>
      %107 = arith.divf %105, %106 : vector<16x128xf32>
      %108 = vector.extract_strided_slice %97 {offsets = [0, 128], sizes = [16, 128], strides = [1, 1]} : vector<16x384xf32> to vector<16x128xf32>
      %109 = vector.extract_strided_slice %99 {offsets = [0, 128], sizes = [16, 128], strides = [1, 1]} : vector<16x384xf32> to vector<16x128xf32>
      %110 = arith.addf %108, %109 : vector<16x128xf32>
      %111 = arith.negf %110 : vector<16x128xf32>
      %112 = math.exp %111 : vector<16x128xf32>
      %cst_37 = arith.constant 1.000000e+00 : f32
      %113 = vector.broadcast %cst_37 : f32 to vector<16x128xf32>
      %114 = arith.addf %113, %112 : vector<16x128xf32>
      %115 = arith.divf %113, %114 : vector<16x128xf32>
      %116 = vector.extract_strided_slice %97 {offsets = [0, 256], sizes = [16, 128], strides = [1, 1]} : vector<16x384xf32> to vector<16x128xf32>
      %117 = vector.extract_strided_slice %99 {offsets = [0, 256], sizes = [16, 128], strides = [1, 1]} : vector<16x384xf32> to vector<16x128xf32>
      %118 = vector.broadcast %31 : vector<1x128xf32> to vector<16x128xf32>
      %119 = arith.addf %117, %118 : vector<16x128xf32>
      %120 = arith.mulf %107, %119 : vector<16x128xf32>
      %121 = arith.addf %116, %120 : vector<16x128xf32>
      %122 = math.tanh %121 : vector<16x128xf32>
      %123 = arith.subf %93, %122 : vector<16x128xf32>
      %124 = arith.mulf %115, %123 : vector<16x128xf32>
      %125 = arith.addf %122, %124 : vector<16x128xf32>
      %c3_i32 = arith.constant 3 : i32
      %126 = vector.broadcast %c3_i32 : i32 to vector<16x128xi32>
      %127 = arith.cmpi eq, %22, %126 : vector<16x128xi32>
      %128 = arith.select %127, %125, %96 : vector<16x128xi1>, vector<16x128xf32>
      %129 = vector.extract_strided_slice %29 {offsets = [48, 0], sizes = [16, 384], strides = [1, 1]} : vector<128x384xf32> to vector<16x384xf32>
      %130 = arith.truncf %125 : vector<16x128xf32> to vector<16x128xbf16>
      %cst_38 = arith.constant dense<0.000000e+00> : vector<16x384xf32>
      %131 = tpu.matmul %130, %30, %cst_38 {dimension_numbers = #tpu.dot_dimension_numbers<[1], [0], [0], [1], [0, 0, 1, 1], [], []>} : vector<16x128xbf16>, vector<128x384xbf16>, vector<16x384xf32> -> vector<16x384xf32>
      %132 = vector.extract_strided_slice %129 {offsets = [0, 0], sizes = [16, 128], strides = [1, 1]} : vector<16x384xf32> to vector<16x128xf32>
      %133 = vector.extract_strided_slice %131 {offsets = [0, 0], sizes = [16, 128], strides = [1, 1]} : vector<16x384xf32> to vector<16x128xf32>
      %134 = arith.addf %132, %133 : vector<16x128xf32>
      %135 = arith.negf %134 : vector<16x128xf32>
      %136 = math.exp %135 : vector<16x128xf32>
      %cst_39 = arith.constant 1.000000e+00 : f32
      %137 = vector.broadcast %cst_39 : f32 to vector<16x128xf32>
      %138 = arith.addf %137, %136 : vector<16x128xf32>
      %139 = arith.divf %137, %138 : vector<16x128xf32>
      %140 = vector.extract_strided_slice %129 {offsets = [0, 128], sizes = [16, 128], strides = [1, 1]} : vector<16x384xf32> to vector<16x128xf32>
      %141 = vector.extract_strided_slice %131 {offsets = [0, 128], sizes = [16, 128], strides = [1, 1]} : vector<16x384xf32> to vector<16x128xf32>
      %142 = arith.addf %140, %141 : vector<16x128xf32>
      %143 = arith.negf %142 : vector<16x128xf32>
      %144 = math.exp %143 : vector<16x128xf32>
      %cst_40 = arith.constant 1.000000e+00 : f32
      %145 = vector.broadcast %cst_40 : f32 to vector<16x128xf32>
      %146 = arith.addf %145, %144 : vector<16x128xf32>
      %147 = arith.divf %145, %146 : vector<16x128xf32>
      %148 = vector.extract_strided_slice %129 {offsets = [0, 256], sizes = [16, 128], strides = [1, 1]} : vector<16x384xf32> to vector<16x128xf32>
      %149 = vector.extract_strided_slice %131 {offsets = [0, 256], sizes = [16, 128], strides = [1, 1]} : vector<16x384xf32> to vector<16x128xf32>
      %150 = vector.broadcast %31 : vector<1x128xf32> to vector<16x128xf32>
      %151 = arith.addf %149, %150 : vector<16x128xf32>
      %152 = arith.mulf %139, %151 : vector<16x128xf32>
      %153 = arith.addf %148, %152 : vector<16x128xf32>
      %154 = math.tanh %153 : vector<16x128xf32>
      %155 = arith.subf %125, %154 : vector<16x128xf32>
      %156 = arith.mulf %147, %155 : vector<16x128xf32>
      %157 = arith.addf %154, %156 : vector<16x128xf32>
      %c4_i32 = arith.constant 4 : i32
      %158 = vector.broadcast %c4_i32 : i32 to vector<16x128xi32>
      %159 = arith.cmpi eq, %22, %158 : vector<16x128xi32>
      %160 = arith.select %159, %157, %128 : vector<16x128xi1>, vector<16x128xf32>
      %161 = vector.extract_strided_slice %29 {offsets = [64, 0], sizes = [16, 384], strides = [1, 1]} : vector<128x384xf32> to vector<16x384xf32>
      %162 = arith.truncf %157 : vector<16x128xf32> to vector<16x128xbf16>
      %cst_41 = arith.constant dense<0.000000e+00> : vector<16x384xf32>
      %163 = tpu.matmul %162, %30, %cst_41 {dimension_numbers = #tpu.dot_dimension_numbers<[1], [0], [0], [1], [0, 0, 1, 1], [], []>} : vector<16x128xbf16>, vector<128x384xbf16>, vector<16x384xf32> -> vector<16x384xf32>
      %164 = vector.extract_strided_slice %161 {offsets = [0, 0], sizes = [16, 128], strides = [1, 1]} : vector<16x384xf32> to vector<16x128xf32>
      %165 = vector.extract_strided_slice %163 {offsets = [0, 0], sizes = [16, 128], strides = [1, 1]} : vector<16x384xf32> to vector<16x128xf32>
      %166 = arith.addf %164, %165 : vector<16x128xf32>
      %167 = arith.negf %166 : vector<16x128xf32>
      %168 = math.exp %167 : vector<16x128xf32>
      %cst_42 = arith.constant 1.000000e+00 : f32
      %169 = vector.broadcast %cst_42 : f32 to vector<16x128xf32>
      %170 = arith.addf %169, %168 : vector<16x128xf32>
      %171 = arith.divf %169, %170 : vector<16x128xf32>
      %172 = vector.extract_strided_slice %161 {offsets = [0, 128], sizes = [16, 128], strides = [1, 1]} : vector<16x384xf32> to vector<16x128xf32>
      %173 = vector.extract_strided_slice %163 {offsets = [0, 128], sizes = [16, 128], strides = [1, 1]} : vector<16x384xf32> to vector<16x128xf32>
      %174 = arith.addf %172, %173 : vector<16x128xf32>
      %175 = arith.negf %174 : vector<16x128xf32>
      %176 = math.exp %175 : vector<16x128xf32>
      %cst_43 = arith.constant 1.000000e+00 : f32
      %177 = vector.broadcast %cst_43 : f32 to vector<16x128xf32>
      %178 = arith.addf %177, %176 : vector<16x128xf32>
      %179 = arith.divf %177, %178 : vector<16x128xf32>
      %180 = vector.extract_strided_slice %161 {offsets = [0, 256], sizes = [16, 128], strides = [1, 1]} : vector<16x384xf32> to vector<16x128xf32>
      %181 = vector.extract_strided_slice %163 {offsets = [0, 256], sizes = [16, 128], strides = [1, 1]} : vector<16x384xf32> to vector<16x128xf32>
      %182 = vector.broadcast %31 : vector<1x128xf32> to vector<16x128xf32>
      %183 = arith.addf %181, %182 : vector<16x128xf32>
      %184 = arith.mulf %171, %183 : vector<16x128xf32>
      %185 = arith.addf %180, %184 : vector<16x128xf32>
      %186 = math.tanh %185 : vector<16x128xf32>
      %187 = arith.subf %157, %186 : vector<16x128xf32>
      %188 = arith.mulf %179, %187 : vector<16x128xf32>
      %189 = arith.addf %186, %188 : vector<16x128xf32>
      %c5_i32 = arith.constant 5 : i32
      %190 = vector.broadcast %c5_i32 : i32 to vector<16x128xi32>
      %191 = arith.cmpi eq, %22, %190 : vector<16x128xi32>
      %192 = arith.select %191, %189, %160 : vector<16x128xi1>, vector<16x128xf32>
      %193 = vector.extract_strided_slice %29 {offsets = [80, 0], sizes = [16, 384], strides = [1, 1]} : vector<128x384xf32> to vector<16x384xf32>
      %194 = arith.truncf %189 : vector<16x128xf32> to vector<16x128xbf16>
      %cst_44 = arith.constant dense<0.000000e+00> : vector<16x384xf32>
      %195 = tpu.matmul %194, %30, %cst_44 {dimension_numbers = #tpu.dot_dimension_numbers<[1], [0], [0], [1], [0, 0, 1, 1], [], []>} : vector<16x128xbf16>, vector<128x384xbf16>, vector<16x384xf32> -> vector<16x384xf32>
      %196 = vector.extract_strided_slice %193 {offsets = [0, 0], sizes = [16, 128], strides = [1, 1]} : vector<16x384xf32> to vector<16x128xf32>
      %197 = vector.extract_strided_slice %195 {offsets = [0, 0], sizes = [16, 128], strides = [1, 1]} : vector<16x384xf32> to vector<16x128xf32>
      %198 = arith.addf %196, %197 : vector<16x128xf32>
      %199 = arith.negf %198 : vector<16x128xf32>
      %200 = math.exp %199 : vector<16x128xf32>
      %cst_45 = arith.constant 1.000000e+00 : f32
      %201 = vector.broadcast %cst_45 : f32 to vector<16x128xf32>
      %202 = arith.addf %201, %200 : vector<16x128xf32>
      %203 = arith.divf %201, %202 : vector<16x128xf32>
      %204 = vector.extract_strided_slice %193 {offsets = [0, 128], sizes = [16, 128], strides = [1, 1]} : vector<16x384xf32> to vector<16x128xf32>
      %205 = vector.extract_strided_slice %195 {offsets = [0, 128], sizes = [16, 128], strides = [1, 1]} : vector<16x384xf32> to vector<16x128xf32>
      %206 = arith.addf %204, %205 : vector<16x128xf32>
      %207 = arith.negf %206 : vector<16x128xf32>
      %208 = math.exp %207 : vector<16x128xf32>
      %cst_46 = arith.constant 1.000000e+00 : f32
      %209 = vector.broadcast %cst_46 : f32 to vector<16x128xf32>
      %210 = arith.addf %209, %208 : vector<16x128xf32>
      %211 = arith.divf %209, %210 : vector<16x128xf32>
      %212 = vector.extract_strided_slice %193 {offsets = [0, 256], sizes = [16, 128], strides = [1, 1]} : vector<16x384xf32> to vector<16x128xf32>
      %213 = vector.extract_strided_slice %195 {offsets = [0, 256], sizes = [16, 128], strides = [1, 1]} : vector<16x384xf32> to vector<16x128xf32>
      %214 = vector.broadcast %31 : vector<1x128xf32> to vector<16x128xf32>
      %215 = arith.addf %213, %214 : vector<16x128xf32>
      %216 = arith.mulf %203, %215 : vector<16x128xf32>
      %217 = arith.addf %212, %216 : vector<16x128xf32>
      %218 = math.tanh %217 : vector<16x128xf32>
      %219 = arith.subf %189, %218 : vector<16x128xf32>
      %220 = arith.mulf %211, %219 : vector<16x128xf32>
      %221 = arith.addf %218, %220 : vector<16x128xf32>
      %c6_i32 = arith.constant 6 : i32
      %222 = vector.broadcast %c6_i32 : i32 to vector<16x128xi32>
      %223 = arith.cmpi eq, %22, %222 : vector<16x128xi32>
      %224 = arith.select %223, %221, %192 : vector<16x128xi1>, vector<16x128xf32>
      %225 = vector.extract_strided_slice %29 {offsets = [96, 0], sizes = [16, 384], strides = [1, 1]} : vector<128x384xf32> to vector<16x384xf32>
      %226 = arith.truncf %221 : vector<16x128xf32> to vector<16x128xbf16>
      %cst_47 = arith.constant dense<0.000000e+00> : vector<16x384xf32>
      %227 = tpu.matmul %226, %30, %cst_47 {dimension_numbers = #tpu.dot_dimension_numbers<[1], [0], [0], [1], [0, 0, 1, 1], [], []>} : vector<16x128xbf16>, vector<128x384xbf16>, vector<16x384xf32> -> vector<16x384xf32>
      %228 = vector.extract_strided_slice %225 {offsets = [0, 0], sizes = [16, 128], strides = [1, 1]} : vector<16x384xf32> to vector<16x128xf32>
      %229 = vector.extract_strided_slice %227 {offsets = [0, 0], sizes = [16, 128], strides = [1, 1]} : vector<16x384xf32> to vector<16x128xf32>
      %230 = arith.addf %228, %229 : vector<16x128xf32>
      %231 = arith.negf %230 : vector<16x128xf32>
      %232 = math.exp %231 : vector<16x128xf32>
      %cst_48 = arith.constant 1.000000e+00 : f32
      %233 = vector.broadcast %cst_48 : f32 to vector<16x128xf32>
      %234 = arith.addf %233, %232 : vector<16x128xf32>
      %235 = arith.divf %233, %234 : vector<16x128xf32>
      %236 = vector.extract_strided_slice %225 {offsets = [0, 128], sizes = [16, 128], strides = [1, 1]} : vector<16x384xf32> to vector<16x128xf32>
      %237 = vector.extract_strided_slice %227 {offsets = [0, 128], sizes = [16, 128], strides = [1, 1]} : vector<16x384xf32> to vector<16x128xf32>
      %238 = arith.addf %236, %237 : vector<16x128xf32>
      %239 = arith.negf %238 : vector<16x128xf32>
      %240 = math.exp %239 : vector<16x128xf32>
      %cst_49 = arith.constant 1.000000e+00 : f32
      %241 = vector.broadcast %cst_49 : f32 to vector<16x128xf32>
      %242 = arith.addf %241, %240 : vector<16x128xf32>
      %243 = arith.divf %241, %242 : vector<16x128xf32>
      %244 = vector.extract_strided_slice %225 {offsets = [0, 256], sizes = [16, 128], strides = [1, 1]} : vector<16x384xf32> to vector<16x128xf32>
      %245 = vector.extract_strided_slice %227 {offsets = [0, 256], sizes = [16, 128], strides = [1, 1]} : vector<16x384xf32> to vector<16x128xf32>
      %246 = vector.broadcast %31 : vector<1x128xf32> to vector<16x128xf32>
      %247 = arith.addf %245, %246 : vector<16x128xf32>
      %248 = arith.mulf %235, %247 : vector<16x128xf32>
      %249 = arith.addf %244, %248 : vector<16x128xf32>
      %250 = math.tanh %249 : vector<16x128xf32>
      %251 = arith.subf %221, %250 : vector<16x128xf32>
      %252 = arith.mulf %243, %251 : vector<16x128xf32>
      %253 = arith.addf %250, %252 : vector<16x128xf32>
      %c7_i32 = arith.constant 7 : i32
      %254 = vector.broadcast %c7_i32 : i32 to vector<16x128xi32>
      %255 = arith.cmpi eq, %22, %254 : vector<16x128xi32>
      %256 = arith.select %255, %253, %224 : vector<16x128xi1>, vector<16x128xf32>
      %257 = vector.extract_strided_slice %29 {offsets = [112, 0], sizes = [16, 384], strides = [1, 1]} : vector<128x384xf32> to vector<16x384xf32>
      %258 = arith.truncf %253 : vector<16x128xf32> to vector<16x128xbf16>
      %cst_50 = arith.constant dense<0.000000e+00> : vector<16x384xf32>
      %259 = tpu.matmul %258, %30, %cst_50 {dimension_numbers = #tpu.dot_dimension_numbers<[1], [0], [0], [1], [0, 0, 1, 1], [], []>} : vector<16x128xbf16>, vector<128x384xbf16>, vector<16x384xf32> -> vector<16x384xf32>
      %260 = vector.extract_strided_slice %257 {offsets = [0, 0], sizes = [16, 128], strides = [1, 1]} : vector<16x384xf32> to vector<16x128xf32>
      %261 = vector.extract_strided_slice %259 {offsets = [0, 0], sizes = [16, 128], strides = [1, 1]} : vector<16x384xf32> to vector<16x128xf32>
      %262 = arith.addf %260, %261 : vector<16x128xf32>
      %263 = arith.negf %262 : vector<16x128xf32>
      %264 = math.exp %263 : vector<16x128xf32>
      %cst_51 = arith.constant 1.000000e+00 : f32
      %265 = vector.broadcast %cst_51 : f32 to vector<16x128xf32>
      %266 = arith.addf %265, %264 : vector<16x128xf32>
      %267 = arith.divf %265, %266 : vector<16x128xf32>
      %268 = vector.extract_strided_slice %257 {offsets = [0, 128], sizes = [16, 128], strides = [1, 1]} : vector<16x384xf32> to vector<16x128xf32>
      %269 = vector.extract_strided_slice %259 {offsets = [0, 128], sizes = [16, 128], strides = [1, 1]} : vector<16x384xf32> to vector<16x128xf32>
      %270 = arith.addf %268, %269 : vector<16x128xf32>
      %271 = arith.negf %270 : vector<16x128xf32>
      %272 = math.exp %271 : vector<16x128xf32>
      %cst_52 = arith.constant 1.000000e+00 : f32
      %273 = vector.broadcast %cst_52 : f32 to vector<16x128xf32>
      %274 = arith.addf %273, %272 : vector<16x128xf32>
      %275 = arith.divf %273, %274 : vector<16x128xf32>
      %276 = vector.extract_strided_slice %257 {offsets = [0, 256], sizes = [16, 128], strides = [1, 1]} : vector<16x384xf32> to vector<16x128xf32>
      %277 = vector.extract_strided_slice %259 {offsets = [0, 256], sizes = [16, 128], strides = [1, 1]} : vector<16x384xf32> to vector<16x128xf32>
      %278 = vector.broadcast %31 : vector<1x128xf32> to vector<16x128xf32>
      %279 = arith.addf %277, %278 : vector<16x128xf32>
      %280 = arith.mulf %267, %279 : vector<16x128xf32>
      %281 = arith.addf %276, %280 : vector<16x128xf32>
      %282 = math.tanh %281 : vector<16x128xf32>
      %283 = arith.subf %253, %282 : vector<16x128xf32>
      %284 = arith.mulf %275, %283 : vector<16x128xf32>
      %285 = arith.addf %282, %284 : vector<16x128xf32>
      %c8_i32 = arith.constant 8 : i32
      %286 = vector.broadcast %c8_i32 : i32 to vector<16x128xi32>
      %287 = arith.cmpi eq, %22, %286 : vector<16x128xi32>
      %288 = arith.select %287, %285, %256 : vector<16x128xi1>, vector<16x128xf32>
      %289 = arith.truncf %288 : vector<16x128xf32> to vector<16x128xbf16>
      %c0_53 = arith.constant 0 : index
      %c0_54 = arith.constant 0 : index
      %290 = vector.load %arg13[%c0_53, %c0_54] : memref<128x128xbf16, #tpu.memory_space<vmem>>, vector<128x128xbf16>
      %cst_55 = arith.constant dense<0.000000e+00> : vector<16x128xf32>
      %291 = tpu.matmul %289, %290, %cst_55 {dimension_numbers = #tpu.dot_dimension_numbers<[1], [0], [0], [1], [0, 0, 1, 1], [], []>} : vector<16x128xbf16>, vector<128x128xbf16>, vector<16x128xf32> -> vector<16x128xf32>
      %c0_56 = arith.constant 0 : index
      %c0_57 = arith.constant 0 : index
      %292 = vector.load %arg14[%c0_56, %c0_57] : memref<1x128xf32, #tpu.memory_space<vmem>>, vector<1x128xf32>
      %293 = vector.broadcast %292 : vector<1x128xf32> to vector<16x128xf32>
      %294 = arith.addf %291, %293 : vector<16x128xf32>
      %c0_i32_58 = arith.constant 0 : i32
      %295 = vector.broadcast %c0_i32_58 : i32 to vector<16x128xi32>
      %296 = arith.cmpi sgt, %22, %295 : vector<16x128xi32>
      %cst_59 = arith.constant 3.000000e-01 : f32
      %297 = vector.broadcast %cst_59 : f32 to vector<16x128xf32>
      %298 = arith.mulf %297, %13 : vector<16x128xf32>
      %cst_60 = arith.constant 0.699999988 : f32
      %299 = vector.broadcast %cst_60 : f32 to vector<16x128xf32>
      %300 = arith.mulf %299, %294 : vector<16x128xf32>
      %301 = arith.addf %298, %300 : vector<16x128xf32>
      %302 = arith.select %296, %301, %13 : vector<16x128xi1>, vector<16x128xf32>
      %c0_61 = arith.constant 0 : index
      %c0_62 = arith.constant 0 : index
      %303 = vector.load %arg15[%c0_61, %c0_62] : memref<16x128xf32, #tpu.memory_space<vmem>>, vector<16x128xf32>
      tpu.vector_store %arg15[%c0_61, %c0_62], %302 {strides = array<i32>} : memref<16x128xf32, #tpu.memory_space<vmem>>, vector<16x128xf32>,
    } else {
    }
    return
  }
  func.func @transform_0(%arg0: i32, %arg1: memref<1xi32, #tpu.memory_space<smem>>) -> (i32, i32) {
    %c0_i32 = arith.constant 0 : i32
    %c0_i32_0 = arith.constant 0 : i32
    return %arg0, %c0_i32 : i32, i32
  }
  func.func @transform_1(%arg0: i32, %arg1: memref<1xi32, #tpu.memory_space<smem>>) -> (i32, i32, i32) {
    %c0_i32 = arith.constant 0 : i32
    %c0_i32_0 = arith.constant 0 : i32
    %c0_i32_1 = arith.constant 0 : i32
    return %c0_i32, %arg0, %c0_i32_0 : i32, i32, i32
  }
  func.func @transform_2(%arg0: i32, %arg1: memref<1xi32, #tpu.memory_space<smem>>) -> (i32, i32) {
    %c0_i32 = arith.constant 0 : i32
    %c0_i32_0 = arith.constant 0 : i32
    return %arg0, %c0_i32 : i32, i32
  }
  func.func @transform_3(%arg0: i32, %arg1: memref<1xi32, #tpu.memory_space<smem>>) -> (i32, i32) {
    %c0_i32 = arith.constant 0 : i32
    %c0_i32_0 = arith.constant 0 : i32
    %c0_i32_1 = arith.constant 0 : i32
    return %c0_i32, %c0_i32_0 : i32, i32
  }
  func.func @transform_4(%arg0: i32, %arg1: memref<1xi32, #tpu.memory_space<smem>>) -> (i32, i32) {
    %c0_i32 = arith.constant 0 : i32
    %c0_i32_0 = arith.constant 0 : i32
    %c0_i32_1 = arith.constant 0 : i32
    return %c0_i32, %c0_i32_0 : i32, i32
  }
  func.func @transform_5(%arg0: i32, %arg1: memref<1xi32, #tpu.memory_space<smem>>) -> (i32, i32) {
    %c0_i32 = arith.constant 0 : i32
    %c0_i32_0 = arith.constant 0 : i32
    %c0_i32_1 = arith.constant 0 : i32
    return %c0_i32, %c0_i32_0 : i32, i32
  }
  func.func @transform_6(%arg0: i32, %arg1: memref<1xi32, #tpu.memory_space<smem>>) -> (i32, i32) {
    %c0_i32 = arith.constant 0 : i32
    %c0_i32_0 = arith.constant 0 : i32
    %c0_i32_1 = arith.constant 0 : i32
    return %c0_i32, %c0_i32_0 : i32, i32
  }
  func.func @transform_7(%arg0: i32, %arg1: memref<1xi32, #tpu.memory_space<smem>>) -> (i32, i32) {
    %c0_i32 = arith.constant 0 : i32
    %c0_i32_0 = arith.constant 0 : i32
    %c0_i32_1 = arith.constant 0 : i32
    return %c0_i32, %c0_i32_0 : i32, i32
  }
  func.func @transform_8(%arg0: i32, %arg1: memref<1xi32, #tpu.memory_space<smem>>) -> (i32, i32) {
    %c0_i32 = arith.constant 0 : i32
    %c0_i32_0 = arith.constant 0 : i32
    %c0_i32_1 = arith.constant 0 : i32
    return %c0_i32, %c0_i32_0 : i32, i32
  }
  func.func @transform_9(%arg0: i32, %arg1: memref<1xi32, #tpu.memory_space<smem>>) -> (i32, i32) {
    %c0_i32 = arith.constant 0 : i32
    %c0_i32_0 = arith.constant 0 : i32
    %c0_i32_1 = arith.constant 0 : i32
    return %c0_i32, %c0_i32_0 : i32, i32
  }
  func.func @transform_10(%arg0: i32, %arg1: memref<1xi32, #tpu.memory_space<smem>>) -> (i32, i32) {
    %c0_i32 = arith.constant 0 : i32
    %c0_i32_0 = arith.constant 0 : i32
    %c0_i32_1 = arith.constant 0 : i32
    return %c0_i32, %c0_i32_0 : i32, i32
  }
  func.func @transform_11(%arg0: i32, %arg1: memref<1xi32, #tpu.memory_space<smem>>) -> (i32, i32) {
    %c0_i32 = arith.constant 0 : i32
    %c0_i32_0 = arith.constant 0 : i32
    %c0_i32_1 = arith.constant 0 : i32
    return %c0_i32, %c0_i32_0 : i32, i32
  }
  func.func @transform_12(%arg0: i32, %arg1: memref<1xi32, #tpu.memory_space<smem>>) -> (i32, i32) {
    %c0_i32 = arith.constant 0 : i32
    %c0_i32_0 = arith.constant 0 : i32
    %c0_i32_1 = arith.constant 0 : i32
    return %c0_i32, %c0_i32_0 : i32, i32
  }
  func.func @transform_13(%arg0: i32, %arg1: memref<1xi32, #tpu.memory_space<smem>>) -> (i32, i32) {
    %c0_i32 = arith.constant 0 : i32
    %c0_i32_0 = arith.constant 0 : i32
    return %arg0, %c0_i32 : i32, i32
  }
}

</mosaic_0001>

<bundles_post_ra>
// kernel: jinbeer_forward.1
= control target key start
LH: loop header
LB: loop body
LE: loop exit
PB: predicated region body
PF: predicated region fallthrough
CT: control target
= control target key end

     0   :  { %v3270_v33 = vmov 0   ;;  %vm429_vm0 = vcmask 293888   ;;  %vm433_vm1 = vcmask 1041408   ;;  %v3271_v51 = vmov 0.0   ;;  %s4510_s0 = inlined_call_operand.<no memory space> [shape: s32[1], index: 0, kind: input, shape index: {}]   ;;  %s4511_s2 = inlined_call_operand.vmem [shape: bf16[8,16,52], index: 2, kind: input, shape index: {}]   ;;  %s4512_s3 = inlined_call_operand.vmem [shape: s32[16,1], index: 3, kind: input, shape index: {}]   ;;  %s4513_s4 = inlined_call_operand.vmem [shape: bf16[676,128], index: 4, kind: input, shape index: {}]   ;;  %s4514_s8 = inlined_call_operand.vmem [shape: bf16[52,384], index: 8, kind: input, shape index: {}]   ;;  %s4515_s9 = inlined_call_operand.vmem [shape: f32[1,384], index: 9, kind: input, shape index: {}]   ;;  %s4516_s10 = inlined_call_operand.vmem [shape: bf16[128,384], index: 10, kind: input, shape index: {}]   ;;  %s4517_s11 = inlined_call_operand.vmem [shape: f32[1,128], index: 11, kind: input, shape index: {}]   ;;  %s4518_s12 = inlined_call_operand.vmem [shape: bf16[128,128], index: 12, kind: input, shape index: {}]   ;;  %s4519_s13 = inlined_call_operand.vmem [shape: f32[1,128], index: 13, kind: input, shape index: {}]   ;;  %s4520_s1 = inlined_call_operand.vmem [shape: bf16[16,676], index: 1, kind: input, shape index: {}]   ;;  %s4521_s6 = inlined_call_operand.vmem [shape: bf16[128,128], index: 6, kind: input, shape index: {}]   ;;  %s4522_s5 = inlined_call_operand.vmem [shape: f32[1,128], index: 5, kind: input, shape index: {}]   ;;  %s4523_s7 = inlined_call_operand.vmem [shape: f32[1,128], index: 7, kind: input, shape index: {}]   ;;  %s4524_s14 = inlined_call_operand.vmem [shape: f32[16,128], index: 14, kind: output, shape index: {}]  }
   0x1   :  { %v2961_v0 = vld [vmem:[%s4513_s4 + $0x78] sm:$0xff]   ;;  %v2965_v4 = vld [vmem:[%s4513_s4 + $0x70] sm:$0xff]   ;;  %v2969_v8 = vld [vmem:[%s4513_s4 + $0x68] sm:$0xff]   ;;  %vm3272_vm2 = vmmov 0   ;;  %p2480_p0 = scmp.le.s32.totalorder %s4510_s0, 0 }
   0x2   :  { %v2962_v1 = vld [vmem:[%s4513_s4 + $0x38] sm:$0xff]   ;;  %2584 = vmatprep.subr.bf16.mxu0 %v2961_v0  ;;  %v2966_v5 = vld [vmem:[%s4513_s4 + $0x30] sm:$0xff]   ;;  %v2970_v9 = vld [vmem:[%s4513_s4 + $0x28] sm:$0xff]  }
   0x3   :  { %v2963_v2 = vld [vmem:[%s4513_s4 + $0xf8] sm:$0xff]   ;;  %2585 = vmatpush3.bf16.msra.mxu0 %v2962_v1  ;;  %v2967_v6 = vld [vmem:[%s4513_s4 + $0xf0] sm:$0xff]   ;;  %v2971_v10 = vld [vmem:[%s4513_s4 + $0xe8] sm:$0xff]  }
   0x4   :  { %v2964_v3 = vld [vmem:[%s4513_s4 + $0xb8] sm:$0xff]   ;;  %2606 = vmatprep.subr.bf16.mxu1 %v2963_v2  ;;  %2586 = vmatprep.subr.bf16.mxu0 %v2965_v4  ;;  %v2968_v7 = vld [vmem:[%s4513_s4 + $0xb0] sm:$0xff]   ;;  %v2972_v11 = vld [vmem:[%s4513_s4 + $0xa8] sm:$0xff]  }
   0x5   :  { %2607 = vmatpush3.bf16.msra.mxu1 %v2964_v3  ;;  %v2973_v12 = vld [vmem:[%s4513_s4 + $0x60] sm:$0xff]   ;;  %v2977_v16 = vld [vmem:[%s4513_s4 + $0x58] sm:$0xff]   ;;  %v2981_v20 = vld [vmem:[%s4513_s4 + $0x50] sm:$0xff]  }
   0x6   :  { %2608 = vmatprep.subr.bf16.mxu1 %v2967_v6  ;;  %v2974_v13 = vld [vmem:[%s4513_s4 + $0x20] sm:$0xff]   ;;  %v2978_v17 = vld [vmem:[%s4513_s4 + $0x18] sm:$0xff]   ;;  %v2982_v21 = vld [vmem:[%s4513_s4 + $0x10] sm:$0xff]  }
   0x7   :  { %2587 = vmatpush3.bf16.msra.mxu0 %v2966_v5  ;;  %v2975_v14 = vld [vmem:[%s4513_s4 + $0xe0] sm:$0xff]   ;;  %v2979_v18 = vld [vmem:[%s4513_s4 + $0xd8] sm:$0xff]   ;;  %v2983_v22 = vld [vmem:[%s4513_s4 + $0xd0] sm:$0xff]  }
   0x8   :  { %2588 = vmatprep.subr.bf16.mxu0 %v2969_v8  ;;  %v2976_v15 = vld [vmem:[%s4513_s4 + $0xa0] sm:$0xff]   ;;  %v2980_v19 = vld [vmem:[%s4513_s4 + $0x98] sm:$0xff]   ;;  %v2984_v23 = vld [vmem:[%s4513_s4 + $0x90] sm:$0xff]  }
   0x9   :  { %2609 = vmatpush3.bf16.msra.mxu1 %v2968_v7  ;;  %v2985_v24 = vld [vmem:[%s4513_s4 + $0x48] sm:$0xff]   ;;  %v2989_v28 = vld [vmem:[%s4513_s4 + $0x40] sm:$0xff]   ;;  %v2999_v37 = vld [vmem:[%s4513_s4 + $0x138] sm:$0xff]  }
   0xa   :  { %2610 = vmatprep.subr.bf16.mxu1 %v2971_v10  ;;  %v2986_v25 = vld [vmem:[%s4513_s4 + $0x8] sm:$0xff]   ;;  %v2990_v29 = vld [vmem:[%s4513_s4] sm:$0xff]   ;;  %v3000_v38 = vld [vmem:[%s4513_s4 + $0x130] sm:$0xff]  }
   0xb   :  { %2589 = vmatpush3.bf16.msra.mxu0 %v2970_v9  ;;  %v2987_v26 = vld [vmem:[%s4513_s4 + $0xc8] sm:$0xff]   ;;  %v2991_v30 = vld [vmem:[%s4513_s4 + $0xc0] sm:$0xff]   ;;  %v3003_v42 = vld [vmem:[%s4513_s4 + $0x118] sm:$0xff]  }
   0xc   :  { %2590 = vmatprep.subr.bf16.mxu0 %v2973_v12  ;;  %v2988_v27 = vld [vmem:[%s4513_s4 + $0x88] sm:$0xff]   ;;  %v2992_v31 = vld [vmem:[%s4520_s1] ss:$24 sps:$4 sm:$0xff]   ;;  %v2994_v32 = vld [vmem:[%s4520_s1 + $0x4] ss:$24 sps:$4 sm:$0xff]  }
   0xd   :  { %2611 = vmatpush3.bf16.msra.mxu1 %v2972_v11  ;;  %v2995_v34 = vld [vmem:[%s4513_s4 + $0x80] sm:$0xff]   ;;  %469 = vmatprep.mubr.bf16.mxu0 %v2994_v32  ;;  %v3001_v39 = vld [vmem:[%s4513_s4 + $0x128] sm:$0xff]   ;;  %v3004_v43 = vld [vmem:[%s4513_s4 + $0x110] sm:$0xff]  }
   0xe   :  { %2612 = vmatprep.subr.bf16.mxu1 %v2975_v14  ;;  %v2996_v35 = vld [vmem:[%s4520_s1 + $0x8] ss:$24 sps:$4 sm:$0xff]   ;;  %v2998_v36 = vld [vmem:[%s4520_s1 + $0xc] ss:$24 sps:$4 sm:$0xff]   ;;  %v3013_v52 = vld [vmem:[%s4521_s6 + $0x38] sm:$0xff]  }
   0xf   :  { %2591 = vmatpush3.bf16.msra.mxu0 %v2974_v13  ;;  %510 = vmatprep.mubr.bf16.mxu1 %v2998_v36  ;;  %v3002_v40 = vld [vmem:[%s4513_s4 + $0x120] sm:$0xff]   ;;  %v3010_v41 = vld [vmem:[%s4520_s1 + $0x14] ss:$24 sps:$4 sm:$0xff]   ;;  %v3007_v46 = vld [vmem:[%s4513_s4 + $0x150] ss:$0 sps:$4 sm:$0x33]  }
  0x10   :  { %2592 = vmatprep.subr.bf16.mxu0 %v2977_v16  ;;  %v3005_v44 = vld [vmem:[%s4513_s4 + $0x108] sm:$0xff]   ;;  %v3006_v45 = vld [vmem:[%s4513_s4 + $0x100] sm:$0xff]   ;;  %v435_v47 = vsel %vm433_vm1, %v3007_v46, 0  ;;  %v3014_v53 = vld [vmem:[%s4521_s6 + $0x30] sm:$0xff]  }
  0x11   :  { %2613 = vmatpush3.bf16.msra.mxu1 %v2976_v15  ;;  %v3008_v48 = vld [vmem:[%s4513_s4 + $0x148] sm:$0xff]   ;;  %v3009_v49 = vld [vmem:[%s4513_s4 + $0x140] sm:$0xff]   ;;  %v3017_v56 = vld [vmem:[%s4521_s6 + $0x18] sm:$0xff]  }
  0x12   :  { %2614 = vmatprep.subr.bf16.mxu1 %v2979_v18  ;;  %v3012_v50 = vld [vmem:[%s4520_s1 + $0x10] ss:$24 sps:$4 sm:$0xff]   ;;  %v3016_v55 = vld [vmem:[%s4521_s6 + $0x20] sm:$0xff]  }
  0x13   :  { %2593 = vmatpush3.bf16.msra.mxu0 %v2978_v17  ;;  %v3015_v54 = vld [vmem:[%s4521_s6 + $0x28] sm:$0xff]   ;;  %v3018_v57 = vld [vmem:[%s4521_s6 + $0x10] sm:$0xff]   ;;  %v3020_v59 = vld [vmem:[%s4521_s6] sm:$0xff]  }
  0x14   :  { %2594 = vmatprep.subr.bf16.mxu0 %v2981_v20  ;;  %v3019_v58 = vld [vmem:[%s4521_s6 + $0x8] sm:$0xff]   ;;  %v2420_v4 = vld [vmem:[%s4522_s5] ss:$0 sm:$0xff] }
  0x15   :  { %2615 = vmatpush3.bf16.msra.mxu1 %v2980_v19 }
  0x16   :  { %2616 = vmatprep.subr.bf16.mxu1 %v2983_v22  ;;  %v2471_v22 = vld [vmem:[%s4523_s7] ss:$0 sm:$0xff] }
  0x17   :  { %2595 = vmatpush3.bf16.msra.mxu0 %v2982_v21 }
  0x18   :  { %2596 = vmatprep.subr.bf16.mxu0 %v2985_v24 }
  0x19   :  { %2617 = vmatpush3.bf16.msra.mxu1 %v2984_v23 }
  0x1a   :  { %2618 = vmatprep.subr.bf16.mxu1 %v2987_v26 }
  0x1b   :  { %2597 = vmatpush3.bf16.msra.mxu0 %v2986_v25 }
  0x1c   :  { %2598 = vmatprep.subr.bf16.mxu0 %v2989_v28 }
  0x1d   :  { %2619 = vmatpush3.bf16.msra.mxu1 %v2988_v27 }
  0x1e   :  { %2620 = vmatprep.subr.bf16.mxu1 %v2991_v30 }
  0x1f   :  { %2599 = vmatpush3.bf16.msra.mxu0 %v2990_v29 }
  0x20   :  { %519 = vmatprep.subr.bf16.mxu0 %v3270_v33 }
  0x21   :  { %2621 = vmatpush3.bf16.msra.mxu1 %v2995_v34 }
  0x22   :  { %470 = vmatmul.mubr.bf16.vlgmr.msra.gmra.mxu0 %v2992_v31  ;;  %2730 = vmatprep.subr.bf16.mxu1 %v3271_v51 }
  0x23   :  { %520 = vmatpush1.bf16.msra.mxu0 %v2999_v37  ;;  %2470 = vmatprep.mubr.msk.bf16.mxu0 %vm429_vm0, %v3010_v41 }
  0x24   :  { %511 = vmatmul.mubr.bf16.vlgmr.msra.gmra.mxu1 %v2996_v35  ;;  %521 = vmatprep.subr.bf16.mxu0 %v3270_v33 }
  0x25   :  { %2731 = vmatpush3.bf16.msra.mxu1 %v3013_v52  ;;  %2746 = vmatprep.mubr.msk.bf16.mxu1 %vm3272_vm2, %v3271_v51 }
  0x26   :  { %2732 = vmatprep.subr.bf16.mxu1 %v3271_v51 }
  0x27   :  { %522 = vmatpush1.bf16.msra.mxu0 %v3000_v38 }
  0x28   :  { %523 = vmatprep.subr.bf16.mxu0 %v3270_v33 }
  0x29   :  { %2733 = vmatpush3.bf16.msra.mxu1 %v3014_v53 }
  0x2a   :  { %2734 = vmatprep.subr.bf16.mxu1 %v3271_v51 }
  0x2b   :  { %524 = vmatpush1.bf16.msra.mxu0 %v3001_v39 }
  0x2c   :  { %525 = vmatprep.subr.bf16.mxu0 %v3270_v33 }
  0x2d   :  { %2735 = vmatpush3.bf16.msra.mxu1 %v3015_v54 }
  0x2e   :  { %2736 = vmatprep.subr.bf16.mxu1 %v3271_v51 }
  0x2f   :  { %526 = vmatpush1.bf16.msra.mxu0 %v3002_v40 }
  0x30   :  { %527 = vmatprep.subr.bf16.mxu0 %v3270_v33 }
  0x31   :  { %2737 = vmatpush3.bf16.msra.mxu1 %v3016_v55 }
  0x32   :  { %2738 = vmatprep.subr.bf16.mxu1 %v3271_v51 }
  0x33   :  { %528 = vmatpush1.bf16.msra.mxu0 %v3003_v42 }
  0x34   :  { %529 = vmatprep.subr.bf16.mxu0 %v3270_v33 }
  0x35   :  { %2739 = vmatpush3.bf16.msra.mxu1 %v3017_v56 }
  0x36   :  { %2740 = vmatprep.subr.bf16.mxu1 %v3271_v51 }
  0x37   :  { %530 = vmatpush1.bf16.msra.mxu0 %v3004_v43 }
  0x38   :  { %531 = vmatprep.subr.bf16.mxu0 %v3270_v33 }
  0x39   :  { %2741 = vmatpush3.bf16.msra.mxu1 %v3018_v57 }
  0x3a   :  { %2742 = vmatprep.subr.bf16.mxu1 %v3271_v51 }
  0x3b   :  { %532 = vmatpush1.bf16.msra.mxu0 %v3005_v44 }
  0x3c   :  { %533 = vmatprep.subr.bf16.mxu0 %v3270_v33 }
  0x3d   :  { %2743 = vmatpush3.bf16.msra.mxu1 %v3019_v58 }
  0x3e   :  { %2744 = vmatprep.subr.bf16.mxu1 %v3271_v51 }
  0x3f   :  { %534 = vmatpush1.bf16.msra.mxu0 %v3006_v45 }
  0x40   :  { %545 = vmatprep.subr.bf16.mxu0 %v3270_v33 }
  0x41   :  { %2745 = vmatpush3.bf16.msra.mxu1 %v3020_v59 }
  0x43   :  { %546 = vmatpush2.bf16.msra.mxu0 %v435_v47 }
  0x44   :  { %547 = vmatprep.subr.bf16.mxu0 %v3270_v33 }
  0x47   :  { %548 = vmatpush2.bf16.msra.mxu0 %v3008_v48 }
  0x48   :  { %549 = vmatprep.subr.bf16.mxu0 %v3270_v33 }
  0x4b   :  { %550 = vmatpush2.bf16.msra.mxu0 %v3009_v49 }
  0x4e   :  { %552 = vmatmul.mubr.bf16.vlgmr.msra.gmra.mxu0 %v3012_v50 }
  0xe2   :  { %v2600_v60 = vpop.f32.mrf.mxu0 }
  0xe4   :  { %v2601_v61 = vpop.f32.mrf.mxu0  ;;  %v2622_v62 = vpop.f32.mrf.mxu1 }
  0xe5   :  { %v2602_v3 = vadd.f32 %v2601_v61, %v2600_v60 }
  0xe6   :  { %v2603_v63 = vpop.f32.mrf.mxu0  ;;  %v2623_v0 = vpop.f32.mrf.mxu1 }
  0xe7   :  { %v472_v7 = vadd.f32 %v2602_v3, %v2420_v4  ;;  %v2624_v8 = vadd.f32 %v2623_v0, %v2622_v62 }
  0xe8   :  { %v2604_v1 = vpop.f32.mrf.mxu0  ;;  %v2625_v2 = vpop.f32.mrf.mxu1 }
  0xe9   :  { %v2605_v5 = vadd.f32 %v2604_v1, %v2603_v63  ;;  %v513_v12 = vadd.f32 %v2624_v8, %v472_v7 }
  0xea   :  { %v2626_v6 = vpop.f32.mrf.mxu1 }
  0xeb   :  { %v475_v9 = vadd.f32 %v2605_v5, %v2420_v4  ;;  %v2627_v10 = vadd.f32 %v2626_v6, %v2625_v2 }
  0xed   :  { %v516_v15 = vadd.f32 %v2627_v10, %v475_v9 }
 0x10e   :  { %v553_v11 = vpop.f32.mrf.mxu0 }
 0x10f   :  { %v554_v14 = vadd.f32 %v553_v11, %v513_v12 }
 0x110   :  { %v555_v13 = vpop.f32.mrf.mxu0 }
 0x111   :  { %v560_v19 = vmax.f32 %v554_v14, 0.0 }
 0x112   :  { %v556_v16 = vpop.f32.mrf.mxu0 }
 0x113   :  { %v557_v17 = vadd.f32 %v556_v16, %v516_v15 }
 0x114   :  { %v558_v18 = vpop.f32.mrf.mxu0 }
 0x115   :  { %v561_v20 = vmax.f32 %v557_v17, 0.0 }
 0x117   :  { %v562_v21 = vpack.c.bf16 %v561_v20, %v560_v19 }
 0x119   :  { %2747 = vmatmul.mubr.bf16.vlgmr.msra.gmra.mxu1 %v562_v21 }
 0x1d9   :  { %v668_v23 = vpop.f32.mrf.mxu1 }
 0x1da   :  { %v3529_v24 = vadd.f32 %v2471_v22, %v668_v23 }
 0x1db   :  { %v2748_v25 = vpop.f32.mrf.mxu1 }
 0x1dc   :  { %4533 = vst [vmem:[#allocation4_spill] sm:$0xff] %v3529_v24  ;;  %675 = vst [vmem:[%s4524_s14] sm:$0xff] %v3529_v24  ;;  %681 = sbr.rel (%p2480_p0) target bundleno = 2794 (0xaea), region = 57 }
 0x1dd   :  { %v671_v26 = vpop.f32.mrf.mxu1 }
 0x1de   :  { %v3535_v27 = vadd.f32 %v2471_v22, %v671_v26 }
 0x1df   :  { %v2749_v28 = vpop.f32.mrf.mxu1 }
 0x1e0   :  { %4534 = vst [vmem:[#allocation5_spill] sm:$0xff] %v3535_v27  ;;  %676 = vst [vmem:[%s4524_s14 + $0x8] sm:$0xff] %v3535_v27 }
 0x1e1   :  { %v718_v29 = vld [vmem:[%s4514_s8 + $0x48] sm:$0x33]  ;;  %v3023_v31 = vld [vmem:[%s4514_s8 + $0x50] ss:$0 sps:$4 sm:$0x33]   ;;  %v4525_v34 = vmov 0   ;;  %v722_v16 = vlaneseq }
 0x1e2   :  { %v2499_v30 = vcombine.high %v718_v29, %v718_v29  ;;  %v2498_v32 = vcombine.low %v718_v29, %v718_v29  ;;  %v3025_v33 = vld [vmem:[%s4514_s8 + $0x34] ss:$12 sps:$4 sm:$0xff]   ;;  %899 = vmatprep.mubr.bf16.mxu0 %v4525_v34  ;;  %3021 = vset.pattern.permute.xlu0 %v4525_v34  ;;  %v3027_v35 = vld [vmem:[%s4514_s8 + $0x38] ss:$12 sps:$4 sm:$0xff]   ;;  %v865_v37 = vsel %vm433_vm1, %v3023_v31, 0  ;;  %vm833_vm3 = vcmask 424960  }
 0x1e3   :  { %2954 = vmatprep.subr.msk.bf16.mxu1 %vm433_vm1, %v3023_v31  ;;  %v3028_v38 = vld [vmem:[%s4514_s8 + $0x30] ss:$12 sps:$4 sm:$0xff]   ;;  %v3031_v40 = vld [vmem:[%s4514_s8 + $0x20] ss:$12 sps:$4 sm:$0xff]   ;;  %v3032_v41 = vld [vmem:[%s4514_s8 + $0x18] ss:$12 sps:$4 sm:$0xff]  }
 0x1e4   :  { %2501 = vmatprep.subr.msk.bf16.mxu0 %vm433_vm1, %v2499_v30  ;;  %v859_v36 = vsel %vm433_vm1, %v2498_v32, 0  ;;  %2751 = vmatpush3.bf16.msra.mxu1 %v865_v37  ;;  %v3029_v39 = vld [vmem:[%s4514_s8 + $0x1c] ss:$12 sps:$4 sm:$0xff]   ;;  %v3033_v42 = vld [vmem:[%s4514_s8 + $0x4] ss:$12 sps:$4 sm:$0xff]   ;;  %v4527_v50 = vmov 0.0  }
 0x1e5   :  { %876 = vmatpush1.bf16.msra.mxu0 %v859_v36  ;;  %2752 = vmatprep.subr.bf16.mxu1 %v3027_v35  ;;  %v3037_v43 = vld [vmem:[%s4511_s2] sm:$0xff]   ;;  %v3035_v44 = vld [vmem:[%s4514_s8 + $0x8] ss:$12 sps:$4 sm:$0xff]   ;;  %v3590_v46 = vld [vmem:[%s4516_s10 + $0xac] ss:$12 sps:$4 sm:$0xff]   ;;  %vm3275_vm4 = vmmov 0  }
 0x1e6   :  { %877 = vmatprep.subr.bf16.mxu0 %v3025_v33  ;;  %2758 = vmatprep.mubr.msk.bf16.mxu1 %vm833_vm3, %v3037_v43  ;;  %v3036_v45 = vld [vmem:[%s4514_s8] ss:$12 sps:$4 sm:$0xff]   ;;  %v3598_v48 = vld [vmem:[%s4516_s10 + $0xa8] ss:$12 sps:$4 sm:$0xff]   ;;  %v3603_v49 = vld [vmem:[%s4516_s10 + $0xb0] ss:$12 sps:$4 sm:$0xff]  }
 0x1e7   :  { %v3038_v47 = vld [vmem:[%s4511_s2 + $0x8] sm:$0xff]   ;;  %v3610_v51 = vld [vmem:[%s4516_s10 + $0x94] ss:$12 sps:$4 sm:$0xff]   ;;  %v3620_v53 = vld [vmem:[%s4516_s10 + $0x90] ss:$12 sps:$4 sm:$0xff]   ;;  %v723_v17 = vshrl.u32 %v722_v16, 7 }
 0x1e8   :  { %2753 = vmatpush3.bf16.msra.mxu1 %v3027_v35  ;;  %v3046_v52 = vld [vmem:[%s4511_s2 + $0x10] sm:$0xff]   ;;  %v3627_v54 = vld [vmem:[%s4516_s10 + $0x98] ss:$12 sps:$4 sm:$0xff]   ;;  %v3634_v55 = vld [vmem:[%s4516_s10 + $0x7c] ss:$12 sps:$4 sm:$0xff]  }
 0x1e9   :  { %878 = vmatpush1.bf16.msra.mxu0 %v3028_v38  ;;  %2754 = vmatprep.subr.bf16.mxu1 %v3031_v40  ;;  %v3047_v56 = vld [vmem:[%s4511_s2 + $0x18] sm:$0xff]   ;;  %v3651_v58 = vld [vmem:[%s4516_s10 + $0x64] ss:$12 sps:$4 sm:$0xff]   ;;  %v3661_v60 = vld [vmem:[%s4516_s10 + $0x80] ss:$12 sps:$4 sm:$0xff]   ;;  %v732_v18 = vsub.s32 2, %v723_v17 }
 0x1ea   :  { %879 = vmatprep.subr.bf16.mxu0 %v3029_v39  ;;  %v3645_v57 = vld [vmem:[%s4516_s10 + $0x78] ss:$12 sps:$4 sm:$0xff]   ;;  %v3669_v61 = vld [vmem:[%s4516_s10 + $0x60] ss:$12 sps:$4 sm:$0xff]   ;;  %v3686_v0 = vld [vmem:[%s4516_s10 + $0x68] ss:$12 sps:$4 sm:$0xff]  }
 0x1eb   :  { %v3055_v59 = vld [vmem:[%s4511_s2 + $0x20] sm:$0xff]   ;;  %v3677_v62 = vld [vmem:[%s4516_s10 + $0x4c] ss:$12 sps:$4 sm:$0xff]   ;;  %v3691_v1 = vld [vmem:[%s4516_s10 + $0x48] ss:$12 sps:$4 sm:$0xff]   ;;  %v724_v28 = vsub.s32 0, %v723_v17 }
 0x1ec   :  { %2755 = vmatpush3.bf16.msra.mxu1 %v3031_v40  ;;  %v3056_v63 = vld [vmem:[%s4511_s2 + $0x28] sm:$0xff]   ;;  %v3698_v2 = vld [vmem:[%s4516_s10 + $0x34] ss:$12 sps:$4 sm:$0xff]   ;;  %v3707_v4 = vld [vmem:[%s4516_s10 + $0x30] ss:$12 sps:$4 sm:$0xff]   ;;  %v728_v31 = vsub.s32 1, %v723_v17 }
 0x1ed   :  { %880 = vmatpush1.bf16.msra.mxu0 %v3032_v41  ;;  %2756 = vmatprep.subr.bf16.mxu1 %v3035_v44  ;;  %v3064_v3 = vld [vmem:[%s4511_s2 + $0x30] sm:$0xff]   ;;  %v3715_v5 = vld [vmem:[%s4516_s10 + $0x1c] ss:$12 sps:$4 sm:$0xff]   ;;  %v682_v7 = vld [vmem:[%s4512_s3] sm:$0xff] }
 0x1ee   :  { %881 = vmatprep.subr.bf16.mxu0 %v3033_v42  ;;  %v3720_v6 = vld [vmem:[%s4516_s10 + $0x50] ss:$12 sps:$4 sm:$0xff]   ;;  %v683_v9 = vld [vmem:[%s4512_s3 + $0x8] sm:$0xff]  ;;  %v3738_v10 = vld [vmem:[%s4516_s10 + $0x18] ss:$12 sps:$4 sm:$0xff]   ;;  %685 = vperm.xlu0 %3021, %v682_v7  }
 0x1ef   :  { %v3065_v8 = vld [vmem:[%s4511_s2 + $0x38] sm:$0xff]   ;;  %v3748_v11 = vld [vmem:[%s4516_s10 + $0x4] ss:$12 sps:$4 sm:$0xff]   ;;  %v3761_v13 = vld [vmem:[%s4516_s10] ss:$12 sps:$4 sm:$0xff]  }
 0x1f0   :  { %2757 = vmatpush3.bf16.msra.mxu1 %v3035_v44  ;;  %v3753_v12 = vld [vmem:[%s4516_s10 + $0x38] ss:$12 sps:$4 sm:$0xff]   ;;  %v3770_v14 = vld [vmem:[%s4516_s10 + $0x20] ss:$12 sps:$4 sm:$0xff]   ;;  %v3779_v15 = vld [vmem:[%s4516_s10 + $0x8] ss:$12 sps:$4 sm:$0xff]  }
 0x1f1   :  { %882 = vmatpush1.bf16.msra.mxu0 %v3036_v45  ;;  %1238 = vmatprep.subr.bf16.mxu1 %v3590_v46  ;;  %v720_v19 = vld [vmem:[%s4515_s9] sm:$0x7] }
 0x1f2   :  { %2774 = vmatprep.subr.bf16.mxu0 %v4527_v50  ;;  %688 = vperm.xlu0 %3021, %v683_v9   ;;  %v3833_v20 = vrot.slane %v720_v19, %v732_v18  ;;  %v3851_v36 = vrot.slane %v720_v19, %v724_v28  ;;  %v3853_v39 = vrot.slane %v720_v19, %v728_v31 }
 0x1f3   :  { %2759 = vmatmul.mubr.msk.bf16.vlgmr.msra.gmra.mxu1 %vm833_vm3, %v3038_v47 }
 0x1f4   :  { %2502 = vmatmul.mubr.msk.bf16.vlgmr.msra.gmra.mxu0 %vm833_vm3, %v3037_v43  ;;  %1239 = vmatpush1.bf16.msra.mxu1 %v3598_v48 }
 0x1f5   :  { %2775 = vmatpush3.bf16.msra.mxu0 %v3603_v49  ;;  %1240 = vmatprep.subr.bf16.mxu1 %v3610_v51 }
 0x1f6   :  { %909 = vmatprep.mubr.bf16.mxu0 %v4525_v34  ;;  %2762 = vmatprep.mubr.msk.bf16.mxu1 %vm833_vm3, %v3046_v52 }
 0x1f7   :  { %2776 = vmatprep.subr.bf16.mxu0 %v4527_v50 }
 0x1f8   :  { %1241 = vmatpush1.bf16.msra.mxu1 %v3620_v53 }
 0x1f9   :  { %2777 = vmatpush3.bf16.msra.mxu0 %v3627_v54  ;;  %1242 = vmatprep.subr.bf16.mxu1 %v3634_v55 }
 0x1fa   :  { %2778 = vmatprep.subr.bf16.mxu0 %v4527_v50 }
 0x1fb   :  { %2763 = vmatmul.mubr.msk.bf16.gmra.mxu1 %vm833_vm3, %v3047_v56 }
 0x1fc   :  { %2503 = vmatmul.mubr.msk.bf16.gmra.mxu0 %vm833_vm3, %v3038_v47  ;;  %1243 = vmatpush1.bf16.msra.mxu1 %v3645_v57 }
 0x1fd   :  { %919 = vmatprep.mubr.bf16.mxu0 %v4525_v34  ;;  %1244 = vmatprep.subr.bf16.mxu1 %v3651_v58 }
 0x1fe   :  { %2766 = vmatprep.mubr.msk.bf16.mxu1 %vm833_vm3, %v3055_v59  ;;  %2779 = vmatpush3.bf16.msra.mxu0 %v3661_v60 }
 0x1ff   :  { %2780 = vmatprep.subr.bf16.mxu0 %v4527_v50 }
 0x200   :  { %1245 = vmatpush1.bf16.msra.mxu1 %v3669_v61 }
 0x201   :  { %1246 = vmatprep.subr.bf16.mxu1 %v3677_v62 }
 0x202   :  { %2781 = vmatpush3.bf16.msra.mxu0 %v3686_v0 }
 0x203   :  { %2767 = vmatmul.mubr.msk.bf16.gmra.mxu1 %vm833_vm3, %v3056_v63  ;;  %2782 = vmatprep.subr.bf16.mxu0 %v4527_v50 }
 0x204   :  { %2504 = vmatmul.mubr.msk.bf16.gmra.mxu0 %vm833_vm3, %v3046_v52  ;;  %1247 = vmatpush1.bf16.msra.mxu1 %v3691_v1 }
 0x205   :  { %929 = vmatprep.mubr.bf16.mxu0 %v4525_v34  ;;  %1248 = vmatprep.subr.bf16.mxu1 %v3698_v2 }
 0x206   :  { %2770 = vmatprep.mubr.msk.bf16.mxu1 %vm833_vm3, %v3064_v3  ;;  %2783 = vmatpush3.bf16.msra.mxu0 %v3720_v6 }
 0x207   :  { %2784 = vmatprep.subr.bf16.mxu0 %v4527_v50 }
 0x208   :  { %1249 = vmatpush1.bf16.msra.mxu1 %v3707_v4 }
 0x209   :  { %1250 = vmatprep.subr.bf16.mxu1 %v3715_v5 }
 0x20a   :  { %2785 = vmatpush3.bf16.msra.mxu0 %v3753_v12 }
 0x20b   :  { %2771 = vmatmul.mubr.msk.bf16.gmra.mxu1 %vm833_vm3, %v3065_v8  ;;  %2786 = vmatprep.subr.bf16.mxu0 %v4527_v50 }
 0x20c   :  { %2505 = vmatmul.mubr.msk.bf16.gmra.mxu0 %vm833_vm3, %v3047_v56  ;;  %1251 = vmatpush1.bf16.msra.mxu1 %v3738_v10 }
 0x20d   :  { %939 = vmatprep.mubr.bf16.mxu0 %v4525_v34  ;;  %1252 = vmatprep.subr.bf16.mxu1 %v3748_v11 }
 0x20e   :  { %1270 = vmatprep.mubr.bf16.mxu1 %v4525_v34  ;;  %2787 = vmatpush3.bf16.msra.mxu0 %v3770_v14 }
 0x20f   :  { %2788 = vmatprep.subr.bf16.mxu0 %v4527_v50 }
 0x210   :  { %1253 = vmatpush1.bf16.msra.mxu1 %v3761_v13 }
 0x211   :  { %1375 = vmatprep.subr.bf16.mxu1 %v3590_v46 }
 0x212   :  { %2789 = vmatpush3.bf16.msra.mxu0 %v3779_v15 }
 0x213   :  { %1271 = vmatmul.mubr.bf16.vlgmr.msra.gmra.mxu1 %v4525_v34  ;;  %2794 = vmatprep.subr.bf16.mxu0 %v4527_v50 }
 0x214   :  { %2506 = vmatmul.mubr.msk.bf16.gmra.mxu0 %vm833_vm3, %v3055_v59  ;;  %1376 = vmatpush1.bf16.msra.mxu1 %v3598_v48 }
 0x215   :  { %949 = vmatprep.mubr.bf16.mxu0 %v4525_v34  ;;  %1407 = vmatprep.mubr.bf16.mxu1 %v4525_v34 }
 0x216   :  { %1377 = vmatprep.subr.bf16.mxu1 %v3610_v51 }
 0x218   :  { %1378 = vmatpush1.bf16.msra.mxu1 %v3620_v53 }
 0x219   :  { %1379 = vmatprep.subr.bf16.mxu1 %v3634_v55 }
 0x21c   :  { %2507 = vmatmul.mubr.msk.bf16.gmra.mxu0 %vm833_vm3, %v3056_v63  ;;  %1380 = vmatpush1.bf16.msra.mxu1 %v3645_v57 }
 0x21d   :  { %959 = vmatprep.mubr.bf16.mxu0 %v4525_v34  ;;  %1381 = vmatprep.subr.bf16.mxu1 %v3651_v58 }
 0x220   :  { %1382 = vmatpush1.bf16.msra.mxu1 %v3669_v61 }
 0x221   :  { %1383 = vmatprep.subr.bf16.mxu1 %v3677_v62 }
 0x224   :  { %2508 = vmatmul.mubr.msk.bf16.gmra.mxu0 %vm833_vm3, %v3064_v3  ;;  %1384 = vmatpush1.bf16.msra.mxu1 %v3691_v1 }
 0x225   :  { %969 = vmatprep.mubr.bf16.mxu0 %v4525_v34  ;;  %1385 = vmatprep.subr.bf16.mxu1 %v3698_v2 }
 0x228   :  { %1386 = vmatpush1.bf16.msra.mxu1 %v3707_v4 }
 0x229   :  { %1387 = vmatprep.subr.bf16.mxu1 %v3715_v5 }
 0x22c   :  { %2509 = vmatmul.mubr.msk.bf16.gmra.mxu0 %vm833_vm3, %v3065_v8  ;;  %1388 = vmatpush1.bf16.msra.mxu1 %v3738_v10 }
 0x22d   :  { %2790 = vmatprep.mubr.msk.bf16.mxu0 %vm3275_vm4, %v4527_v50  ;;  %1389 = vmatprep.subr.bf16.mxu1 %v3748_v11 }
 0x230   :  { %1390 = vmatpush1.bf16.msra.mxu1 %v3761_v13 }
 0x231   :  { %1506 = vmatprep.subr.bf16.mxu1 %v3590_v46 }
 0x234   :  { %2791 = vmatmul.mubr.bf16.vlgmr.msra.gmra.mxu0 %v4525_v34 }
 0x235   :  { %2795 = vmatpush3.bf16.msra.mxu0 %v3603_v49  ;;  %2810 = vmatprep.mubr.msk.bf16.mxu0 %vm3275_vm4, %v4527_v50 }
 0x236   :  { %2796 = vmatprep.subr.bf16.mxu0 %v4527_v50 }
 0x239   :  { %2797 = vmatpush3.bf16.msra.mxu0 %v3627_v54 }
 0x23a   :  { %2798 = vmatprep.subr.bf16.mxu0 %v4527_v50 }
 0x23d   :  { %2799 = vmatpush3.bf16.msra.mxu0 %v3661_v60 }
 0x23e   :  { %2800 = vmatprep.subr.bf16.mxu0 %v4527_v50 }
 0x241   :  { %2801 = vmatpush3.bf16.msra.mxu0 %v3686_v0 }
 0x242   :  { %2802 = vmatprep.subr.bf16.mxu0 %v4527_v50 }
 0x245   :  { %2803 = vmatpush3.bf16.msra.mxu0 %v3720_v6 }
 0x246   :  { %2804 = vmatprep.subr.bf16.mxu0 %v4527_v50 }
 0x249   :  { %2805 = vmatpush3.bf16.msra.mxu0 %v3753_v12 }
 0x24a   :  { %2806 = vmatprep.subr.bf16.mxu0 %v4527_v50 }
 0x24d   :  { %2807 = vmatpush3.bf16.msra.mxu0 %v3770_v14 }
 0x24e   :  { %2808 = vmatprep.subr.bf16.mxu0 %v4527_v50 }
 0x251   :  { %2809 = vmatpush3.bf16.msra.mxu0 %v3779_v15 }
 0x252   :  { %2814 = vmatprep.subr.bf16.mxu0 %v4527_v50 }
 0x2b3   :  { %v2760_v22 = vpop.f32.mrf.mxu1 }
 0x2b4   :  { %v901_v21 = vpop.f32.mrf.mxu0  ;;  %v3836_v23 = vadd.f32 %v2760_v22, %v3833_v20 }
 0x2b5   :  { %v3840_v26 = vpop.f32.mrf.mxu1 }
 0x2b6   :  { %v3838_v25 = vpop.f32.mrf.mxu0 }
 0x2b7   :  { %v2761_v30 = vpop.f32.mrf.mxu1 }
 0x2b8   :  { %v3842_v29 = vpop.f32.mrf.mxu0  ;;  %v3845_v32 = vadd.f32 %v2761_v30, %v3833_v20 }
 0x2b9   :  { %v3849_v35 = vpop.f32.mrf.mxu1 }
 0x2ba   :  { %v3847_v33 = vpop.f32.mrf.mxu0 }
 0x2bb   :  { %v2764_v38 = vpop.f32.mrf.mxu1 }
 0x2bc   :  { %v911_v37 = vpop.f32.mrf.mxu0  ;;  %v3859_v41 = vadd.f32 %v2764_v38, %v3833_v20 }
 0x2bd   :  { %v3856_v40 = vadd.f32 %v911_v37, %v3851_v36  ;;  %v1030_v43 = vpop.f32.mrf.mxu1 }
 0x2be   :  { %v913_v42 = vpop.f32.mrf.mxu0  ;;  %v3865_v45 = vadd.f32 %v1030_v43, %v3833_v20 }
 0x2bf   :  { %v3862_v44 = vadd.f32 %v913_v42, %v3853_v39  ;;  %v2765_v52 = vpop.f32.mrf.mxu1 }
 0x2c0   :  { %v915_v47 = vpop.f32.mrf.mxu0  ;;  %v3871_v59 = vadd.f32 %v2765_v52, %v3833_v20 }
 0x2c1   :  { %v3868_v56 = vadd.f32 %v915_v47, %v3851_v36  ;;  %v1033_v3 = vpop.f32.mrf.mxu1 }
 0x2c2   :  { %4535 = vst [vmem:[#allocation6_spill] sm:$0xff] %v3871_v59  ;;  %v917_v63 = vpop.f32.mrf.mxu0  ;;  %v3877_v8 = vadd.f32 %v1033_v3, %v3833_v20 }
 0x2c3   :  { %v3874_v7 = vadd.f32 %v917_v63, %v3853_v39  ;;  %v2768_v16 = vpop.f32.mrf.mxu1 }
 0x2c4   :  { %v921_v9 = vpop.f32.mrf.mxu0  ;;  %v3883_v18 = vadd.f32 %v2768_v16, %v3833_v20 }
 0x2c5   :  { %v3880_v17 = vadd.f32 %v921_v9, %v3851_v36  ;;  %v1046_v22 = vpop.f32.mrf.mxu1 }
 0x2c6   :  { %4536 = vst [vmem:[#allocation7_spill] sm:$0xff] %v3883_v18  ;;  %v923_v19 = vpop.f32.mrf.mxu0  ;;  %v3889_v30 = vadd.f32 %v1046_v22, %v3833_v20 }
 0x2c7   :  { %v3886_v28 = vadd.f32 %v923_v19, %v3853_v39  ;;  %v2769_v37 = vpop.f32.mrf.mxu1 }
 0x2c8   :  { %4537 = vst [vmem:[#allocation8_spill] sm:$0xff] %v3889_v30  ;;  %v925_v31 = vpop.f32.mrf.mxu0  ;;  %v3895_v42 = vadd.f32 %v2769_v37, %v3833_v20 }
 0x2c9   :  { %v3892_v38 = vadd.f32 %v925_v31, %v3851_v36  ;;  %v1049_v47 = vpop.f32.mrf.mxu1 }
 0x2ca   :  { %4538 = vst [vmem:[#allocation9_spill] sm:$0xff] %v3895_v42  ;;  %v927_v43 = vpop.f32.mrf.mxu0  ;;  %v3901_v63 = vadd.f32 %v1049_v47, %v3833_v20 }
 0x2cb   :  { %v3898_v52 = vadd.f32 %v927_v43, %v3853_v39  ;;  %v2772_v9 = vpop.f32.mrf.mxu1 }
 0x2cc   :  { %4539 = vst [vmem:[#allocation10_spill] sm:$0xff] %v3901_v63  ;;  %v931_v3 = vpop.f32.mrf.mxu0  ;;  %v3907_v19 = vadd.f32 %v2772_v9, %v3833_v20  ;;  %v902_v9 = vadd.f32 %v901_v21, %v3851_v36 }
 0x2cd   :  { %v3904_v16 = vadd.f32 %v931_v3, %v3851_v36  ;;  %v1062_v31 = vpop.f32.mrf.mxu1 }
 0x2ce   :  { %4540 = vst [vmem:[#allocation11_spill] sm:$0xff] %v3907_v19  ;;  %v933_v22 = vpop.f32.mrf.mxu0  ;;  %v3913_v34 = vadd.f32 %v1062_v31, %v3833_v20 }
 0x2cf   :  { %v3910_v37 = vadd.f32 %v933_v22, %v3853_v39  ;;  %v2773_v50 = vpop.f32.mrf.mxu1 }
 0x2d0   :  { %4541 = vst [vmem:[#allocation12_spill] sm:$0xff] %v3913_v34  ;;  %v935_v43 = vpop.f32.mrf.mxu0  ;;  %v3919_v27 = vadd.f32 %v2773_v50, %v3833_v20  ;;  %v906_v50 = vadd.f32 %v3842_v29, %v3851_v36 }
 0x2d1   :  { %v3916_v47 = vadd.f32 %v935_v43, %v3851_v36  ;;  %v1065_v24 = vpop.f32.mrf.mxu1 }
 0x2d2   :  { %4542 = vst [vmem:[#allocation13_spill] sm:$0xff] %v3919_v27  ;;  %v937_v3 = vpop.f32.mrf.mxu0  ;;  %v3926_v22 = vadd.f32 %v1065_v24, %v3833_v20 }
 0x2d3   :  { %v3923_v19 = vadd.f32 %v937_v3, %v3853_v39  ;;  %v1272_v34 = vpop.f32.mrf.mxu1 }
 0x2d4   :  { %4543 = vst [vmem:[#allocation14_spill] sm:$0xff] %v3926_v22  ;;  %v941_v31 = vpop.f32.mrf.mxu0  ;;  %v1322_v43 = vadd.f32 %v1272_v34, %v902_v9 }
 0x2d5   :  { %v3929_v42 = vadd.f32 %v941_v31, %v3851_v36  ;;  %v1274_v63 = vpop.f32.mrf.mxu1 }
 0x2d6   :  { %v943_v18 = vpop.f32.mrf.mxu0  ;;  %v2542_v27 = vmul.f32 -1.442695, %v1322_v43 }
 0x2d7   :  { %4544 = vst [vmem:[#allocation15_spill] sm:$0xff] %v3929_v42  ;;  %v3934_v21 = vadd.f32 %v943_v18, %v3853_v39  ;;  %v1276_v30 = vpop.f32.mrf.mxu1 }
 0x2d8   :  { %v945_v3 = vpop.f32.mrf.mxu0  ;;  %3085 = vpow2.f32 %v2542_v27  ;;  %v1323_v22 = vadd.f32 %v1276_v30, %v906_v50  ;;  %v904_v27 = vadd.f32 %v3838_v25, %v3853_v39 }
 0x2d9   :  { %4545 = vst [vmem:[#allocation16_spill] sm:$0xff] %v3934_v21  ;;  %v3937_v24 = vadd.f32 %v945_v3, %v3851_v36  ;;  %v1278_v21 = vpop.f32.mrf.mxu1 }
 0x2da   :  { %v947_v59 = vpop.f32.mrf.mxu0  ;;  %v2543_v31 = vmul.f32 -1.442695, %v1323_v22  ;;  %v1336_v22 = vadd.f32 %v1274_v63, %v904_v27 }
 0x2db   :  { %4546 = vst [vmem:[#allocation17_spill] sm:$0xff] %v3937_v24  ;;  %v3940_v34 = vadd.f32 %v947_v59, %v3853_v39  ;;  %v908_v59 = vadd.f32 %v3847_v33, %v3853_v39 }
 0x2dc   :  { %v951_v9 = vpop.f32.mrf.mxu0  ;;  %3087 = vpow2.f32 %v2543_v31  ;;  %v2544_v25 = vmul.f32 -1.442695, %v1336_v22 }
 0x2dd   :  { %4547 = vst [vmem:[#allocation18_spill] sm:$0xff] %v3940_v34  ;;  %v3943_v29 = vadd.f32 %v951_v9, %v3851_v36  ;;  %v1337_v9 = vadd.f32 %v1278_v21, %v908_v59 }
 0x2de   :  { %v953_v43 = vpop.f32.mrf.mxu0 }
 0x2df   :  { %4548 = vst [vmem:[#allocation19_spill] sm:$0xff] %v3943_v29  ;;  %v3946_v18 = vadd.f32 %v953_v43, %v3853_v39 }
 0x2e0   :  { %v955_v3 = vpop.f32.mrf.mxu0 }
 0x2e1   :  { %4549 = vst [vmem:[#allocation20_spill] sm:$0xff] %v3946_v18  ;;  %v3951_v30 = vadd.f32 %v955_v3, %v3851_v36 }
 0x2e2   :  { %v957_v50 = vpop.f32.mrf.mxu0 }
 0x2e3   :  { %4550 = vst [vmem:[#allocation21_spill] sm:$0xff] %v3951_v30  ;;  %v3956_v31 = vadd.f32 %v957_v50, %v3853_v39  ;;  %v2545_v30 = vmul.f32 -1.442695, %v1337_v9  ;;  %v3982_v9 = vld [vmem:[%s4517_s11] ss:$0 sm:$0xff] }
 0x2e4   :  { %v961_v29 = vpop.f32.mrf.mxu0 }
 0x2e5   :  { %v3959_v43 = vadd.f32 %v961_v29, %v3851_v36  ;;  %v3086_v18 = vpop.eup %3085 }
 0x2e6   :  { %v963_v34 = vpop.f32.mrf.mxu0  ;;  %v1330_v24 = vadd.f32 1.0, %v3086_v18 }
 0x2e7   :  { %4551 = vst [vmem:[#allocation22_spill] sm:$0xff] %v3959_v43  ;;  %v3962_v3 = vadd.f32 %v963_v34, %v3853_v39 }
 0x2e8   :  { %v965_v42 = vpop.f32.mrf.mxu0  ;;  %3089 = vrcp.f32 %v1330_v24 }
 0x2e9   :  { %4552 = vst [vmem:[#allocation23_spill] sm:$0xff] %v3962_v3  ;;  %v3965_v33 = vadd.f32 %v965_v42, %v3851_v36  ;;  %v3088_v63 = vpop.eup %3087  ;;  %3091 = vpow2.f32 %v2544_v25 }
 0x2ea   :  { %v967_v21 = vpop.f32.mrf.mxu0  ;;  %v1331_v27 = vadd.f32 1.0, %v3088_v63  ;;  %3093 = vpow2.f32 %v2545_v30 }
 0x2eb   :  { %4553 = vst [vmem:[#allocation24_spill] sm:$0xff] %v3965_v33  ;;  %v3968_v29 = vadd.f32 %v967_v21, %v3853_v39 }
 0x2ec   :  { %v971_v59 = vpop.f32.mrf.mxu0  ;;  %3095 = vrcp.f32 %v1331_v27 }
 0x2ed   :  { %4554 = vst [vmem:[#allocation25_spill] sm:$0xff] %v3968_v29  ;;  %v3971_v18 = vadd.f32 %v971_v59, %v3851_v36 }
 0x2ee   :  { %v973_v34 = vpop.f32.mrf.mxu0 }
 0x2ef   :  { %4555 = vst [vmem:[#allocation26_spill] sm:$0xff] %v3971_v18  ;;  %v3974_v22 = vadd.f32 %v973_v34, %v3853_v39  ;;  %v1015_v34 = vadd.f32 %v3840_v26, %v3833_v20 }
 0x2f0   :  { %v975_v24 = vpop.f32.mrf.mxu0 }
 0x2f1   :  { %4556 = vst [vmem:[#allocation27_spill] sm:$0xff] %v3974_v22  ;;  %v3977_v42 = vadd.f32 %v975_v24, %v3851_v36 }
 0x2f2   :  { %v977_v50 = vpop.f32.mrf.mxu0 }
 0x2f3   :  { %4557 = vst [vmem:[#allocation28_spill] sm:$0xff] %v3977_v42  ;;  %v3985_v30 = vadd.f32 %v977_v50, %v3853_v39  ;;  %v1018_v39 = vadd.f32 %v3849_v35, %v3833_v20  ;;  %v4559_v35 = vmov 0.0  }
 0x2f4   :  { %v1315_v25 = vpop.f32.mrf.mxu0 }
 0x2f5   :  { %4558 = vst [vmem:[#allocation29_spill] sm:$0xff] %v3985_v30  ;;  %v1356_v63 = vadd.f32 %v3982_v9, %v1315_v25  ;;  %v3090_v21 = vpop.eup %3089 }
 0x2f6   :  { %v2792_v27 = vpop.f32.mrf.mxu0  ;;  %v3092_v59 = vpop.eup %3091 }
 0x2f7   :  { %v1358_v36 = vmul.f32 %v3090_v21, %v1356_v63  ;;  %v3094_v22 = vpop.eup %3093  ;;  %v1344_v3 = vadd.f32 1.0, %v3092_v59 }
 0x2f8   :  { %v1318_v24 = vpop.f32.mrf.mxu0  ;;  %v1345_v25 = vadd.f32 1.0, %v3094_v22 }
 0x2f9   :  { %v1360_v42 = vadd.f32 %v1358_v36, %v1015_v34  ;;  %v1357_v18 = vadd.f32 %v3982_v9, %v1318_v24  ;;  %v3096_v29 = vpop.eup %3095 }
 0x2fa   :  { %v2793_v33 = vpop.f32.mrf.mxu0 }
 0x2fb   :  { %3097 = vtanh.f32 %v1360_v42  ;;  %v1359_v50 = vmul.f32 %v3096_v29, %v1357_v18 }
 0x2fc   :  { %3099 = vrcp.f32 %v1344_v3  ;;  %v4560_v3 = vmov 0  }
 0x2fd   :  { %v1361_v27 = vadd.f32 %v1359_v50, %v1018_v39 }
 0x2ff   :  { %3101 = vtanh.f32 %v1361_v27 }
 0x300   :  { %3103 = vrcp.f32 %v1345_v25 }
 0x308   :  { %v3098_v26 = vpop.eup %3097 }
 0x309   :  { %v1364_v63 = vsub.f32 0.0, %v3098_v26  ;;  %v3100_v21 = vpop.eup %3099 }
 0x30b   :  { %v1366_v36 = vmul.f32 %v3100_v21, %v1364_v63 }
 0x30c   :  { %v3102_v30 = vpop.eup %3101 }
 0x30d   :  { %v1365_v34 = vsub.f32 0.0, %v3102_v30  ;;  %v3104_v24 = vpop.eup %3103  ;;  %v3993_v59 = vadd.f32 %v3098_v26, %v1366_v36 }
 0x30f   :  { %v1367_v43 = vmul.f32 %v3104_v24, %v1365_v34 }
 0x311   :  { %v3995_v33 = vadd.f32 %v3102_v30, %v1367_v43 }
 0x313   :  { %v1374_v20 = vpack.c.bf16 %v3995_v33, %v3993_v59 }
 0x315   :  { %1408 = vmatmul.mubr.bf16.vlgmr.msra.gmra.mxu1 %v1374_v20  ;;  %2811 = vmatmul.mubr.bf16.vlgmr.msra.gmra.mxu0 %v1374_v20 }
 0x316   :  { %1507 = vmatpush1.bf16.msra.mxu1 %v3598_v48  ;;  %2815 = vmatpush3.bf16.msra.mxu0 %v3603_v49 }
 0x317   :  { %1508 = vmatprep.subr.bf16.mxu1 %v3610_v51  ;;  %2816 = vmatprep.subr.bf16.mxu0 %v4559_v35 }
 0x318   :  { %1538 = vmatprep.mubr.bf16.mxu1 %v4560_v3  ;;  %2830 = vmatprep.mubr.msk.bf16.mxu0 %vm3275_vm4, %v4559_v35 }
 0x31a   :  { %1509 = vmatpush1.bf16.msra.mxu1 %v3620_v53  ;;  %2817 = vmatpush3.bf16.msra.mxu0 %v3627_v54 }
 0x31b   :  { %1510 = vmatprep.subr.bf16.mxu1 %v3634_v55  ;;  %2818 = vmatprep.subr.bf16.mxu0 %v4559_v35 }
 0x31e   :  { %1511 = vmatpush1.bf16.msra.mxu1 %v3645_v57  ;;  %2819 = vmatpush3.bf16.msra.mxu0 %v3661_v60 }
 0x31f   :  { %1512 = vmatprep.subr.bf16.mxu1 %v3651_v58  ;;  %2820 = vmatprep.subr.bf16.mxu0 %v4559_v35 }
 0x322   :  { %1513 = vmatpush1.bf16.msra.mxu1 %v3669_v61  ;;  %2821 = vmatpush3.bf16.msra.mxu0 %v3686_v0 }
 0x323   :  { %1514 = vmatprep.subr.bf16.mxu1 %v3677_v62  ;;  %2822 = vmatprep.subr.bf16.mxu0 %v4559_v35 }
 0x326   :  { %1515 = vmatpush1.bf16.msra.mxu1 %v3691_v1  ;;  %2823 = vmatpush3.bf16.msra.mxu0 %v3720_v6 }
 0x327   :  { %1516 = vmatprep.subr.bf16.mxu1 %v3698_v2  ;;  %2824 = vmatprep.subr.bf16.mxu0 %v4559_v35 }
 0x32a   :  { %1517 = vmatpush1.bf16.msra.mxu1 %v3707_v4  ;;  %2825 = vmatpush3.bf16.msra.mxu0 %v3753_v12 }
 0x32b   :  { %1518 = vmatprep.subr.bf16.mxu1 %v3715_v5  ;;  %2826 = vmatprep.subr.bf16.mxu0 %v4559_v35 }
 0x32e   :  { %1519 = vmatpush1.bf16.msra.mxu1 %v3738_v10  ;;  %2827 = vmatpush3.bf16.msra.mxu0 %v3770_v14 }
 0x32f   :  { %1520 = vmatprep.subr.bf16.mxu1 %v3748_v11  ;;  %2828 = vmatprep.subr.bf16.mxu0 %v4559_v35 }
 0x332   :  { %1521 = vmatpush1.bf16.msra.mxu1 %v3761_v13  ;;  %2829 = vmatpush3.bf16.msra.mxu0 %v3779_v15 }
 0x333   :  { %1637 = vmatprep.subr.bf16.mxu1 %v3590_v46  ;;  %2834 = vmatprep.subr.bf16.mxu0 %v4559_v35 }
 0x3d5   :  { %v1409_v43 = vpop.f32.mrf.mxu1  ;;  %v1452_v29 = vpop.f32.mrf.mxu0 }
 0x3d6   :  { %v1459_v18 = vadd.f32 %v1409_v43, %v3856_v40 }
 0x3d7   :  { %v1411_v22 = vpop.f32.mrf.mxu1  ;;  %v2812_v42 = vpop.f32.mrf.mxu0 }
 0x3d8   :  { %v2547_v30 = vmul.f32 -1.442695, %v1459_v18  ;;  %v1473_v63 = vadd.f32 %v1411_v22, %v3862_v44 }
 0x3d9   :  { %v1413_v39 = vpop.f32.mrf.mxu1  ;;  %v1455_v50 = vpop.f32.mrf.mxu0 }
 0x3da   :  { %3105 = vpow2.f32 %v2547_v30  ;;  %v1460_v25 = vadd.f32 %v1413_v39, %v3868_v56  ;;  %v2549_v34 = vmul.f32 -1.442695, %v1473_v63  ;;  %v1487_v56 = vadd.f32 %v3982_v9, %v1452_v29 }
 0x3db   :  { %v2813_v27 = vpop.f32.mrf.mxu0  ;;  %v1415_v21 = vpop.f32.mrf.mxu1 }
 0x3dc   :  { %v2548_v26 = vmul.f32 -1.442695, %v1460_v25  ;;  %v1474_v36 = vadd.f32 %v1415_v21, %v3874_v7  ;;  %v1488_v7 = vadd.f32 %v3982_v9, %v1455_v50 }
 0x3de   :  { %3107 = vpow2.f32 %v2548_v26  ;;  %v2550_v40 = vmul.f32 -1.442695, %v1474_v36 }
 0x3df   :  { %3109 = vpow2.f32 %v2549_v34 }
 0x3e7   :  { %v3106_v24 = vpop.eup %3105 }
 0x3e8   :  { %v1467_v20 = vadd.f32 1.0, %v3106_v24 }
 0x3ea   :  { %3111 = vrcp.f32 %v1467_v20 }
 0x3eb   :  { %v3108_v43 = vpop.eup %3107  ;;  %3113 = vpow2.f32 %v2550_v40 }
 0x3ec   :  { %v1468_v18 = vadd.f32 1.0, %v3108_v43  ;;  %v3110_v42 = vpop.eup %3109 }
 0x3ed   :  { %v1481_v22 = vadd.f32 1.0, %v3110_v42 }
 0x3ee   :  { %3115 = vrcp.f32 %v1468_v18 }
 0x3f7   :  { %v3112_v30 = vpop.eup %3111 }
 0x3f8   :  { %v1489_v39 = vmul.f32 %v3112_v30, %v1487_v56  ;;  %v3114_v25 = vpop.eup %3113 }
 0x3f9   :  { %v1482_v21 = vadd.f32 1.0, %v3114_v25 }
 0x3fa   :  { %v1491_v44 = vadd.f32 %v1489_v39, %v3836_v23 }
 0x3fb   :  { %v3116_v27 = vpop.eup %3115 }
 0x3fc   :  { %3117 = vtanh.f32 %v1491_v44  ;;  %v1490_v26 = vmul.f32 %v3116_v27, %v1488_v7 }
 0x3fd   :  { %3119 = vrcp.f32 %v1481_v22 }
 0x3fe   :  { %v1492_v63 = vadd.f32 %v1490_v26, %v3845_v32 }
 0x400   :  { %3121 = vtanh.f32 %v1492_v63 }
 0x401   :  { %3123 = vrcp.f32 %v1482_v21 }
 0x409   :  { %v3118_v34 = vpop.eup %3117 }
 0x40a   :  { %v1495_v29 = vsub.f32 %v3993_v59, %v3118_v34  ;;  %v3120_v36 = vpop.eup %3119 }
 0x40c   :  { %v1497_v24 = vmul.f32 %v3120_v36, %v1495_v29 }
 0x40d   :  { %v3122_v20 = vpop.eup %3121 }
 0x40e   :  { %v1496_v23 = vsub.f32 %v3995_v33, %v3122_v20  ;;  %v4044_v40 = vadd.f32 %v3118_v34, %v1497_v24  ;;  %v3124_v50 = vpop.eup %3123 }
 0x410   :  { %v1498_v43 = vmul.f32 %v3124_v50, %v1496_v23 }
 0x412   :  { %v4046_v18 = vadd.f32 %v3122_v20, %v1498_v43 }
 0x414   :  { %v1505_v32 = vpack.c.bf16 %v4046_v18, %v4044_v40 }
 0x416   :  { %1539 = vmatmul.mubr.bf16.vlgmr.msra.gmra.mxu1 %v1505_v32  ;;  %2831 = vmatmul.mubr.bf16.vlgmr.msra.gmra.mxu0 %v1505_v32 }
 0x417   :  { %1638 = vmatpush1.bf16.msra.mxu1 %v3598_v48  ;;  %2835 = vmatpush3.bf16.msra.mxu0 %v3603_v49 }
 0x418   :  { %1639 = vmatprep.subr.bf16.mxu1 %v3610_v51  ;;  %2836 = vmatprep.subr.bf16.mxu0 %v4559_v35 }
 0x419   :  { %1669 = vmatprep.mubr.bf16.mxu1 %v4560_v3  ;;  %2850 = vmatprep.mubr.msk.bf16.mxu0 %vm3275_vm4, %v4559_v35 }
 0x41b   :  { %1640 = vmatpush1.bf16.msra.mxu1 %v3620_v53  ;;  %2837 = vmatpush3.bf16.msra.mxu0 %v3627_v54 }
 0x41c   :  { %1641 = vmatprep.subr.bf16.mxu1 %v3634_v55  ;;  %2838 = vmatprep.subr.bf16.mxu0 %v4559_v35 }
 0x41f   :  { %1642 = vmatpush1.bf16.msra.mxu1 %v3645_v57  ;;  %2839 = vmatpush3.bf16.msra.mxu0 %v3661_v60 }
 0x420   :  { %1643 = vmatprep.subr.bf16.mxu1 %v3651_v58  ;;  %2840 = vmatprep.subr.bf16.mxu0 %v4559_v35 }
 0x423   :  { %1644 = vmatpush1.bf16.msra.mxu1 %v3669_v61  ;;  %2841 = vmatpush3.bf16.msra.mxu0 %v3686_v0 }
 0x424   :  { %1645 = vmatprep.subr.bf16.mxu1 %v3677_v62  ;;  %2842 = vmatprep.subr.bf16.mxu0 %v4559_v35 }
 0x427   :  { %1646 = vmatpush1.bf16.msra.mxu1 %v3691_v1  ;;  %2843 = vmatpush3.bf16.msra.mxu0 %v3720_v6 }
 0x428   :  { %1647 = vmatprep.subr.bf16.mxu1 %v3698_v2  ;;  %2844 = vmatprep.subr.bf16.mxu0 %v4559_v35 }
 0x42b   :  { %1648 = vmatpush1.bf16.msra.mxu1 %v3707_v4  ;;  %2845 = vmatpush3.bf16.msra.mxu0 %v3753_v12 }
 0x42c   :  { %1649 = vmatprep.subr.bf16.mxu1 %v3715_v5  ;;  %2846 = vmatprep.subr.bf16.mxu0 %v4559_v35 }
 0x42f   :  { %1650 = vmatpush1.bf16.msra.mxu1 %v3738_v10  ;;  %2847 = vmatpush3.bf16.msra.mxu0 %v3770_v14 }
 0x430   :  { %1651 = vmatprep.subr.bf16.mxu1 %v3748_v11  ;;  %2848 = vmatprep.subr.bf16.mxu0 %v4559_v35 }
 0x433   :  { %1652 = vmatpush1.bf16.msra.mxu1 %v3761_v13  ;;  %2849 = vmatpush3.bf16.msra.mxu0 %v3779_v15 }
 0x434   :  { %1768 = vmatprep.subr.bf16.mxu1 %v3590_v46  ;;  %2854 = vmatprep.subr.bf16.mxu0 %v4559_v35 }
 0x4d6   :  { %v1540_v48 = vpop.f32.mrf.mxu1  ;;  %v1583_v49 = vpop.f32.mrf.mxu0 }
 0x4d7   :  { %v1590_v51 = vadd.f32 %v1540_v48, %v3880_v17 }
 0x4d8   :  { %v1542_v42 = vpop.f32.mrf.mxu1  ;;  %v2832_v56 = vpop.f32.mrf.mxu0 }
 0x4d9   :  { %v2551_v30 = vmul.f32 -1.442695, %v1590_v51  ;;  %v1604_v27 = vadd.f32 %v1542_v42, %v3886_v28 }
 0x4da   :  { %v1544_v39 = vpop.f32.mrf.mxu1  ;;  %v1586_v25 = vpop.f32.mrf.mxu0 }
 0x4db   :  { %3125 = vpow2.f32 %v2551_v30  ;;  %v1591_v44 = vadd.f32 %v1544_v39, %v3892_v38  ;;  %v2553_v26 = vmul.f32 -1.442695, %v1604_v27  ;;  %v1618_v38 = vadd.f32 %v3982_v9, %v1583_v49 }
 0x4dc   :  { %v2833_v22 = vpop.f32.mrf.mxu0  ;;  %v1546_v46 = vpop.f32.mrf.mxu1 }
 0x4dd   :  { %v2552_v7 = vmul.f32 -1.442695, %v1591_v44  ;;  %v1605_v63 = vadd.f32 %v1546_v46, %v3898_v52  ;;  %v1619_v52 = vadd.f32 %v3982_v9, %v1586_v25  ;;  %v4104_v46 = vld [vmem:[%s4516_s10 + $0xa8] ss:$12 sps:$4 sm:$0xff]  }
 0x4df   :  { %3127 = vpow2.f32 %v2552_v7  ;;  %v2554_v17 = vmul.f32 -1.442695, %v1605_v63  ;;  %v4116_v63 = vld [vmem:[%s4516_s10 + $0x94] ss:$12 sps:$4 sm:$0xff]  }
 0x4e0   :  { %3129 = vpow2.f32 %v2553_v26  ;;  %v4110_v26 = vld [vmem:[%s4516_s10 + $0xb0] ss:$12 sps:$4 sm:$0xff]  }
 0x4e8   :  { %v3126_v21 = vpop.eup %3125 }
 0x4e9   :  { %v1598_v34 = vadd.f32 1.0, %v3126_v21 }
 0x4eb   :  { %3131 = vrcp.f32 %v1598_v34 }
 0x4ec   :  { %v3128_v29 = vpop.eup %3127  ;;  %3133 = vpow2.f32 %v2554_v17 }
 0x4ed   :  { %v1599_v36 = vadd.f32 1.0, %v3128_v29  ;;  %v3130_v24 = vpop.eup %3129 }
 0x4ee   :  { %v1612_v43 = vadd.f32 1.0, %v3130_v24 }
 0x4ef   :  { %3135 = vrcp.f32 %v1599_v36 }
 0x4f8   :  { %v3132_v20 = vpop.eup %3131 }
 0x4f9   :  { %v1620_v23 = vmul.f32 %v3132_v20, %v1618_v38  ;;  %v3134_v50 = vpop.eup %3133 }
 0x4fa   :  { %v1613_v42 = vadd.f32 1.0, %v3134_v50  ;;  %v4561_v50 = vld [vmem:[#allocation6_spill] sm:$0xff] }
 0x4fb   :  { %v1622_v28 = vadd.f32 %v1620_v23, %v3865_v45 }
 0x4fc   :  { %v3136_v32 = vpop.eup %3135 }
 0x4fd   :  { %3137 = vtanh.f32 %v1622_v28  ;;  %v1621_v48 = vmul.f32 %v3136_v32, %v1619_v52 }
 0x4fe   :  { %3139 = vrcp.f32 %v1612_v43 }
 0x4ff   :  { %v1623_v51 = vadd.f32 %v1621_v48, %v3877_v8 }
 0x501   :  { %3141 = vtanh.f32 %v1623_v51 }
 0x502   :  { %3143 = vrcp.f32 %v1613_v42 }
 0x50a   :  { %v3138_v56 = vpop.eup %3137 }
 0x50b   :  { %v1626_v49 = vsub.f32 %v4044_v40, %v3138_v56  ;;  %v3140_v30 = vpop.eup %3139 }
 0x50d   :  { %v1628_v39 = vmul.f32 %v3140_v30, %v1626_v49 }
 0x50e   :  { %v3142_v44 = vpop.eup %3141 }
 0x50f   :  { %v1627_v45 = vsub.f32 %v4046_v18, %v3142_v44  ;;  %v4095_v22 = vadd.f32 %v3138_v56, %v1628_v39  ;;  %v3144_v25 = vpop.eup %3143 }
 0x511   :  { %v1629_v7 = vmul.f32 %v3144_v25, %v1627_v45  ;;  %v4182_v45 = vld [vmem:[%s4516_s10 + $0x90] ss:$12 sps:$4 sm:$0xff]   ;;  %v4188_v25 = vld [vmem:[%s4516_s10 + $0x98] ss:$12 sps:$4 sm:$0xff]  }
 0x513   :  { %v4097_v27 = vadd.f32 %v3142_v44, %v1629_v7  ;;  %v4194_v7 = vld [vmem:[%s4516_s10 + $0x7c] ss:$12 sps:$4 sm:$0xff]  }
 0x515   :  { %v1636_v8 = vpack.c.bf16 %v4097_v27, %v4095_v22 }
 0x517   :  { %1670 = vmatmul.mubr.bf16.vlgmr.msra.gmra.mxu1 %v1636_v8  ;;  %2851 = vmatmul.mubr.bf16.vlgmr.msra.gmra.mxu0 %v1636_v8  ;;  %v4201_v8 = vld [vmem:[%s4516_s10 + $0x78] ss:$12 sps:$4 sm:$0xff]  }
 0x518   :  { %1769 = vmatpush1.bf16.msra.mxu1 %v4104_v46  ;;  %2855 = vmatpush3.bf16.msra.mxu0 %v4110_v26 }
 0x519   :  { %1770 = vmatprep.subr.bf16.mxu1 %v4116_v63  ;;  %2856 = vmatprep.subr.bf16.mxu0 %v4559_v35 }
 0x51a   :  { %1800 = vmatprep.mubr.bf16.mxu1 %v4560_v3  ;;  %2870 = vmatprep.mubr.msk.bf16.mxu0 %vm3275_vm4, %v4559_v35 }
 0x51c   :  { %1771 = vmatpush1.bf16.msra.mxu1 %v3620_v53  ;;  %2857 = vmatpush3.bf16.msra.mxu0 %v3627_v54  ;;  %v4152_v53 = vld [vmem:[%s4516_s10 + $0xac] ss:$12 sps:$4 sm:$0xff]  }
 0x51d   :  { %1772 = vmatprep.subr.bf16.mxu1 %v3634_v55  ;;  %2858 = vmatprep.subr.bf16.mxu0 %v4559_v35 }
 0x520   :  { %1773 = vmatpush1.bf16.msra.mxu1 %v3645_v57  ;;  %2859 = vmatpush3.bf16.msra.mxu0 %v3661_v60 }
 0x521   :  { %1774 = vmatprep.subr.bf16.mxu1 %v3651_v58  ;;  %2860 = vmatprep.subr.bf16.mxu0 %v4559_v35 }
 0x524   :  { %1775 = vmatpush1.bf16.msra.mxu1 %v3669_v61  ;;  %2861 = vmatpush3.bf16.msra.mxu0 %v3686_v0 }
 0x525   :  { %1776 = vmatprep.subr.bf16.mxu1 %v3677_v62  ;;  %2862 = vmatprep.subr.bf16.mxu0 %v4559_v35 }
 0x528   :  { %1777 = vmatpush1.bf16.msra.mxu1 %v3691_v1  ;;  %2863 = vmatpush3.bf16.msra.mxu0 %v3720_v6 }
 0x529   :  { %1778 = vmatprep.subr.bf16.mxu1 %v3698_v2  ;;  %2864 = vmatprep.subr.bf16.mxu0 %v4559_v35 }
 0x52c   :  { %1779 = vmatpush1.bf16.msra.mxu1 %v3707_v4  ;;  %2865 = vmatpush3.bf16.msra.mxu0 %v3753_v12 }
 0x52d   :  { %1780 = vmatprep.subr.bf16.mxu1 %v3715_v5  ;;  %2866 = vmatprep.subr.bf16.mxu0 %v4559_v35 }
 0x530   :  { %1781 = vmatpush1.bf16.msra.mxu1 %v3738_v10  ;;  %2867 = vmatpush3.bf16.msra.mxu0 %v3770_v14 }
 0x531   :  { %1782 = vmatprep.subr.bf16.mxu1 %v3748_v11  ;;  %2868 = vmatprep.subr.bf16.mxu0 %v4559_v35 }
 0x534   :  { %1783 = vmatpush1.bf16.msra.mxu1 %v3761_v13  ;;  %2869 = vmatpush3.bf16.msra.mxu0 %v3779_v15 }
 0x535   :  { %1899 = vmatprep.subr.bf16.mxu1 %v4152_v53  ;;  %2874 = vmatprep.subr.bf16.mxu0 %v4559_v35 }
 0x5d7   :  { %v1671_v54 = vpop.f32.mrf.mxu1  ;;  %v1714_v55 = vpop.f32.mrf.mxu0 }
 0x5d8   :  { %v1721_v57 = vadd.f32 %v1671_v54, %v3904_v16  ;;  %v4207_v54 = vld [vmem:[%s4516_s10 + $0x80] ss:$12 sps:$4 sm:$0xff]  }
 0x5d9   :  { %v1673_v58 = vpop.f32.mrf.mxu1  ;;  %v2852_v60 = vpop.f32.mrf.mxu0 }
 0x5da   :  { %v2555_v61 = vmul.f32 -1.442695, %v1721_v57  ;;  %v1735_v5 = vadd.f32 %v1673_v58, %v3910_v37  ;;  %v4220_v57 = vld [vmem:[%s4516_s10 + $0x60] ss:$12 sps:$4 sm:$0xff]   ;;  %v4226_v58 = vld [vmem:[%s4516_s10 + $0x68] ss:$12 sps:$4 sm:$0xff]  }
 0x5db   :  { %v1675_v62 = vpop.f32.mrf.mxu1  ;;  %v1717_v0 = vpop.f32.mrf.mxu0  ;;  %v4232_v60 = vld [vmem:[%s4516_s10 + $0x4c] ss:$12 sps:$4 sm:$0xff]  }
 0x5dc   :  { %3145 = vpow2.f32 %v2555_v61  ;;  %v1722_v1 = vadd.f32 %v1675_v62, %v3916_v47  ;;  %v2557_v10 = vmul.f32 -1.442695, %v1735_v5  ;;  %v1749_v47 = vadd.f32 %v3982_v9, %v1714_v55  ;;  %v4213_v55 = vld [vmem:[%s4516_s10 + $0x64] ss:$12 sps:$4 sm:$0xff]   ;;  %v4239_v61 = vld [vmem:[%s4516_s10 + $0x48] ss:$12 sps:$4 sm:$0xff]  }
 0x5dd   :  { %v2853_v2 = vpop.f32.mrf.mxu0  ;;  %v1677_v6 = vpop.f32.mrf.mxu1  ;;  %v4245_v62 = vld [vmem:[%s4516_s10 + $0x50] ss:$12 sps:$4 sm:$0xff]   ;;  %v4277_v5 = vld [vmem:[%s4516_s10 + $0x18] ss:$12 sps:$4 sm:$0xff]  }
 0x5de   :  { %v2556_v4 = vmul.f32 -1.442695, %v1722_v1  ;;  %v1736_v11 = vadd.f32 %v1677_v6, %v3923_v19  ;;  %v1750_v19 = vadd.f32 %v3982_v9, %v1717_v0  ;;  %v4251_v0 = vld [vmem:[%s4516_s10 + $0x34] ss:$12 sps:$4 sm:$0xff]   ;;  %v4258_v1 = vld [vmem:[%s4516_s10 + $0x30] ss:$12 sps:$4 sm:$0xff]  }
 0x5df   :  { %v4264_v2 = vld [vmem:[%s4516_s10 + $0x38] ss:$12 sps:$4 sm:$0xff]  }
 0x5e0   :  { %3147 = vpow2.f32 %v2556_v4  ;;  %v2558_v16 = vmul.f32 -1.442695, %v1736_v11  ;;  %v4270_v4 = vld [vmem:[%s4516_s10 + $0x1c] ss:$12 sps:$4 sm:$0xff]   ;;  %v4284_v6 = vld [vmem:[%s4516_s10 + $0x4] ss:$12 sps:$4 sm:$0xff]  }
 0x5e1   :  { %3149 = vpow2.f32 %v2557_v10  ;;  %v4291_v10 = vld [vmem:[%s4516_s10] ss:$12 sps:$4 sm:$0xff]  }
 0x5e9   :  { %v3146_v12 = vpop.eup %3145 }
 0x5ea   :  { %v1729_v13 = vadd.f32 1.0, %v3146_v12  ;;  %v4562_v12 = vld [vmem:[#allocation15_spill] sm:$0xff] }
 0x5ec   :  { %3151 = vrcp.f32 %v1729_v13 }
 0x5ed   :  { %v3148_v21 = vpop.eup %3147  ;;  %3153 = vpow2.f32 %v2558_v16 }
 0x5ee   :  { %v1730_v34 = vadd.f32 1.0, %v3148_v21  ;;  %v3150_v17 = vpop.eup %3149 }
 0x5ef   :  { %v1743_v38 = vadd.f32 1.0, %v3150_v17 }
 0x5f0   :  { %3155 = vrcp.f32 %v1730_v34 }
 0x5f9   :  { %v3152_v29 = vpop.eup %3151 }
 0x5fa   :  { %v1751_v36 = vmul.f32 %v3152_v29, %v1749_v47  ;;  %v3154_v24 = vpop.eup %3153  ;;  %v4563_v29 = vld [vmem:[#allocation17_spill] sm:$0xff] }
 0x5fb   :  { %v1744_v43 = vadd.f32 1.0, %v3154_v24 }
 0x5fc   :  { %v1753_v37 = vadd.f32 %v1751_v36, %v3859_v41 }
 0x5fd   :  { %v3156_v20 = vpop.eup %3155 }
 0x5fe   :  { %3157 = vtanh.f32 %v1753_v37  ;;  %v1752_v23 = vmul.f32 %v3156_v20, %v1750_v19 }
 0x5ff   :  { %3159 = vrcp.f32 %v1743_v38 }
 0x600   :  { %v1754_v28 = vadd.f32 %v1752_v23, %v4561_v50  ;;  %v4565_v23 = vld [vmem:[#allocation18_spill] sm:$0xff] }
 0x602   :  { %3161 = vtanh.f32 %v1754_v28 }
 0x603   :  { %3163 = vrcp.f32 %v1744_v43 }
 0x60b   :  { %v3158_v52 = vpop.eup %3157 }
 0x60c   :  { %v1757_v32 = vsub.f32 %v4095_v22, %v3158_v52  ;;  %v3160_v48 = vpop.eup %3159 }
 0x60e   :  { %v1759_v51 = vmul.f32 %v3160_v48, %v1757_v32 }
 0x60f   :  { %v3162_v42 = vpop.eup %3161 }
 0x610   :  { %v1758_v41 = vsub.f32 %v4097_v27, %v3162_v42  ;;  %v4166_v56 = vadd.f32 %v3158_v52, %v1759_v51  ;;  %v3164_v49 = vpop.eup %3163 }
 0x612   :  { %v1760_v30 = vmul.f32 %v3164_v49, %v1758_v41 }
 0x614   :  { %v4168_v39 = vadd.f32 %v3162_v42, %v1760_v30 }
 0x616   :  { %v1767_v44 = vpack.c.bf16 %v4168_v39, %v4166_v56 }
 0x618   :  { %1801 = vmatmul.mubr.bf16.vlgmr.msra.gmra.mxu1 %v1767_v44  ;;  %2871 = vmatmul.mubr.bf16.vlgmr.msra.gmra.mxu0 %v1767_v44  ;;  %v4566_v44 = vld [vmem:[#allocation8_spill] sm:$0xff] }
 0x619   :  { %1900 = vmatpush1.bf16.msra.mxu1 %v4104_v46  ;;  %2875 = vmatpush3.bf16.msra.mxu0 %v4110_v26 }
 0x61a   :  { %1901 = vmatprep.subr.bf16.mxu1 %v4116_v63  ;;  %2876 = vmatprep.subr.bf16.mxu0 %v4559_v35 }
 0x61b   :  { %1931 = vmatprep.mubr.bf16.mxu1 %v4560_v3  ;;  %2890 = vmatprep.mubr.msk.bf16.mxu0 %vm3275_vm4, %v4559_v35 }
 0x61d   :  { %1902 = vmatpush1.bf16.msra.mxu1 %v4182_v45  ;;  %2877 = vmatpush3.bf16.msra.mxu0 %v4188_v25 }
 0x61e   :  { %1903 = vmatprep.subr.bf16.mxu1 %v4194_v7  ;;  %2878 = vmatprep.subr.bf16.mxu0 %v4559_v35 }
 0x621   :  { %1904 = vmatpush1.bf16.msra.mxu1 %v4201_v8  ;;  %2879 = vmatpush3.bf16.msra.mxu0 %v4207_v54 }
 0x622   :  { %1905 = vmatprep.subr.bf16.mxu1 %v4213_v55  ;;  %2880 = vmatprep.subr.bf16.mxu0 %v4559_v35 }
 0x625   :  { %1906 = vmatpush1.bf16.msra.mxu1 %v4220_v57  ;;  %2881 = vmatpush3.bf16.msra.mxu0 %v4226_v58 }
 0x626   :  { %1907 = vmatprep.subr.bf16.mxu1 %v4232_v60  ;;  %2882 = vmatprep.subr.bf16.mxu0 %v4559_v35 }
 0x629   :  { %1908 = vmatpush1.bf16.msra.mxu1 %v4239_v61  ;;  %2883 = vmatpush3.bf16.msra.mxu0 %v4245_v62 }
 0x62a   :  { %1909 = vmatprep.subr.bf16.mxu1 %v4251_v0  ;;  %2884 = vmatprep.subr.bf16.mxu0 %v4559_v35 }
 0x62d   :  { %1910 = vmatpush1.bf16.msra.mxu1 %v4258_v1  ;;  %2885 = vmatpush3.bf16.msra.mxu0 %v4264_v2 }
 0x62e   :  { %1911 = vmatprep.subr.bf16.mxu1 %v4270_v4  ;;  %2886 = vmatprep.subr.bf16.mxu0 %v4559_v35 }
 0x631   :  { %1912 = vmatpush1.bf16.msra.mxu1 %v4277_v5  ;;  %2887 = vmatpush3.bf16.msra.mxu0 %v3770_v14 }
 0x632   :  { %1913 = vmatprep.subr.bf16.mxu1 %v4284_v6  ;;  %2888 = vmatprep.subr.bf16.mxu0 %v4559_v35 }
 0x635   :  { %1914 = vmatpush1.bf16.msra.mxu1 %v4291_v10  ;;  %2889 = vmatpush3.bf16.msra.mxu0 %v3779_v15  ;;  %v4564_v15 = vld [vmem:[#allocation16_spill] sm:$0xff] }
 0x636   :  { %2030 = vmatprep.subr.bf16.mxu1 %v4152_v53  ;;  %2894 = vmatprep.subr.bf16.mxu0 %v4559_v35 }
 0x6d8   :  { %v1802_v14 = vpop.f32.mrf.mxu1  ;;  %v1845_v11 = vpop.f32.mrf.mxu0 }
 0x6d9   :  { %v1852_v13 = vadd.f32 %v1802_v14, %v4562_v12  ;;  %v1880_v42 = vadd.f32 %v3982_v9, %v1845_v11 }
 0x6da   :  { %v1804_v16 = vpop.f32.mrf.mxu1  ;;  %v2872_v21 = vpop.f32.mrf.mxu0 }
 0x6db   :  { %v2559_v34 = vmul.f32 -1.442695, %v1852_v13  ;;  %v1866_v38 = vadd.f32 %v1804_v16, %v4564_v15 }
 0x6dc   :  { %v1806_v17 = vpop.f32.mrf.mxu1  ;;  %v1848_v47 = vpop.f32.mrf.mxu0 }
 0x6dd   :  { %3165 = vpow2.f32 %v2559_v34  ;;  %v1853_v36 = vadd.f32 %v1806_v17, %v4563_v29  ;;  %v2561_v20 = vmul.f32 -1.442695, %v1866_v38  ;;  %v1881_v13 = vadd.f32 %v3982_v9, %v1848_v47  ;;  %v4567_v34 = vld [vmem:[#allocation10_spill] sm:$0xff] }
 0x6de   :  { %v2873_v24 = vpop.f32.mrf.mxu0  ;;  %v1808_v19 = vpop.f32.mrf.mxu1 }
 0x6df   :  { %v2560_v37 = vmul.f32 -1.442695, %v1853_v36  ;;  %v1867_v50 = vadd.f32 %v1808_v19, %v4565_v23 }
 0x6e1   :  { %3167 = vpow2.f32 %v2560_v37  ;;  %v2562_v52 = vmul.f32 -1.442695, %v1867_v50 }
 0x6e2   :  { %3169 = vpow2.f32 %v2561_v20 }
 0x6ea   :  { %v3166_v28 = vpop.eup %3165 }
 0x6eb   :  { %v1860_v43 = vadd.f32 1.0, %v3166_v28  ;;  %v4344_v28 = vld [vmem:[%s4516_s10 + $0x20] ss:$12 sps:$4 sm:$0xff]  }
 0x6ed   :  { %3171 = vrcp.f32 %v1860_v43  ;;  %v4353_v43 = vld [vmem:[%s4516_s10 + $0x8] ss:$12 sps:$4 sm:$0xff]  }
 0x6ee   :  { %v3168_v32 = vpop.eup %3167  ;;  %3173 = vpow2.f32 %v2562_v52 }
 0x6ef   :  { %v1861_v48 = vadd.f32 1.0, %v3168_v32  ;;  %v3170_v51 = vpop.eup %3169 }
 0x6f0   :  { %v1874_v12 = vadd.f32 1.0, %v3170_v51 }
 0x6f1   :  { %3175 = vrcp.f32 %v1861_v48  ;;  %v4568_v48 = vld [vmem:[#allocation19_spill] sm:$0xff] }
 0x6fa   :  { %v3172_v41 = vpop.eup %3171 }
 0x6fb   :  { %v1882_v49 = vmul.f32 %v3172_v41, %v1880_v42  ;;  %v3174_v30 = vpop.eup %3173 }
 0x6fc   :  { %v1875_v29 = vadd.f32 1.0, %v3174_v30 }
 0x6fd   :  { %v1884_v14 = vadd.f32 %v1882_v49, %v4566_v44 }
 0x6fe   :  { %v3176_v16 = vpop.eup %3175 }
 0x6ff   :  { %3177 = vtanh.f32 %v1884_v14  ;;  %v1883_v21 = vmul.f32 %v3176_v16, %v1881_v13  ;;  %v4569_v14 = vld [vmem:[#allocation21_spill] sm:$0xff] }
 0x700   :  { %3179 = vrcp.f32 %v1874_v12 }
 0x701   :  { %v1885_v17 = vadd.f32 %v1883_v21, %v4567_v34  ;;  %v4570_v21 = vld [vmem:[#allocation20_spill] sm:$0xff] }
 0x703   :  { %3181 = vtanh.f32 %v1885_v17 }
 0x704   :  { %3183 = vrcp.f32 %v1875_v29 }
 0x70c   :  { %v3178_v36 = vpop.eup %3177 }
 0x70d   :  { %v1888_v11 = vsub.f32 %v4166_v56, %v3178_v36  ;;  %v3180_v24 = vpop.eup %3179 }
 0x70f   :  { %v1890_v37 = vmul.f32 %v3180_v24, %v1888_v11 }
 0x710   :  { %v3182_v15 = vpop.eup %3181 }
 0x711   :  { %v1889_v38 = vsub.f32 %v4168_v39, %v3182_v15  ;;  %v4307_v19 = vadd.f32 %v3178_v36, %v1890_v37  ;;  %v3184_v47 = vpop.eup %3183 }
 0x713   :  { %v1891_v20 = vmul.f32 %v3184_v47, %v1889_v38 }
 0x715   :  { %v4309_v23 = vadd.f32 %v3182_v15, %v1891_v20 }
 0x717   :  { %v1898_v50 = vpack.c.bf16 %v4309_v23, %v4307_v19 }
 0x719   :  { %1932 = vmatmul.mubr.bf16.vlgmr.msra.gmra.mxu1 %v1898_v50  ;;  %2891 = vmatmul.mubr.bf16.vlgmr.msra.gmra.mxu0 %v1898_v50 }
 0x71a   :  { %2031 = vmatpush1.bf16.msra.mxu1 %v4104_v46  ;;  %2895 = vmatpush3.bf16.msra.mxu0 %v4110_v26 }
 0x71b   :  { %2032 = vmatprep.subr.bf16.mxu1 %v4116_v63  ;;  %2896 = vmatprep.subr.bf16.mxu0 %v4559_v35 }
 0x71c   :  { %2062 = vmatprep.mubr.bf16.mxu1 %v4560_v3  ;;  %2910 = vmatprep.mubr.msk.bf16.mxu0 %vm3275_vm4, %v4559_v35 }
 0x71e   :  { %2033 = vmatpush1.bf16.msra.mxu1 %v4182_v45  ;;  %2897 = vmatpush3.bf16.msra.mxu0 %v4188_v25 }
 0x71f   :  { %2034 = vmatprep.subr.bf16.mxu1 %v4194_v7  ;;  %2898 = vmatprep.subr.bf16.mxu0 %v4559_v35 }
 0x722   :  { %2035 = vmatpush1.bf16.msra.mxu1 %v4201_v8  ;;  %2899 = vmatpush3.bf16.msra.mxu0 %v4207_v54 }
 0x723   :  { %2036 = vmatprep.subr.bf16.mxu1 %v4213_v55  ;;  %2900 = vmatprep.subr.bf16.mxu0 %v4559_v35 }
 0x726   :  { %2037 = vmatpush1.bf16.msra.mxu1 %v4220_v57  ;;  %2901 = vmatpush3.bf16.msra.mxu0 %v4226_v58 }
 0x727   :  { %2038 = vmatprep.subr.bf16.mxu1 %v4232_v60  ;;  %2902 = vmatprep.subr.bf16.mxu0 %v4559_v35 }
 0x72a   :  { %2039 = vmatpush1.bf16.msra.mxu1 %v4239_v61  ;;  %2903 = vmatpush3.bf16.msra.mxu0 %v4245_v62 }
 0x72b   :  { %2040 = vmatprep.subr.bf16.mxu1 %v4251_v0  ;;  %2904 = vmatprep.subr.bf16.mxu0 %v4559_v35 }
 0x72e   :  { %2041 = vmatpush1.bf16.msra.mxu1 %v4258_v1  ;;  %2905 = vmatpush3.bf16.msra.mxu0 %v4264_v2 }
 0x72f   :  { %2042 = vmatprep.subr.bf16.mxu1 %v4270_v4  ;;  %2906 = vmatprep.subr.bf16.mxu0 %v4559_v35 }
 0x732   :  { %2043 = vmatpush1.bf16.msra.mxu1 %v4277_v5  ;;  %2907 = vmatpush3.bf16.msra.mxu0 %v4344_v28 }
 0x733   :  { %2044 = vmatprep.subr.bf16.mxu1 %v4284_v6  ;;  %2908 = vmatprep.subr.bf16.mxu0 %v4559_v35 }
 0x736   :  { %2045 = vmatpush1.bf16.msra.mxu1 %v4291_v10  ;;  %2909 = vmatpush3.bf16.msra.mxu0 %v4353_v43 }
 0x737   :  { %2161 = vmatprep.subr.bf16.mxu1 %v4152_v53  ;;  %2914 = vmatprep.subr.bf16.mxu0 %v4559_v35 }
 0x7d9   :  { %v1933_v52 = vpop.f32.mrf.mxu1  ;;  %v1976_v32 = vpop.f32.mrf.mxu0 }
 0x7da   :  { %v1983_v51 = vadd.f32 %v1933_v52, %v4568_v48  ;;  %v2011_v47 = vadd.f32 %v3982_v9, %v1976_v32  ;;  %v4571_v48 = vld [vmem:[#allocation7_spill] sm:$0xff] }
 0x7db   :  { %v1935_v42 = vpop.f32.mrf.mxu1  ;;  %v2892_v41 = vpop.f32.mrf.mxu0 }
 0x7dc   :  { %v2563_v49 = vmul.f32 -1.442695, %v1983_v51  ;;  %v1997_v34 = vadd.f32 %v1935_v42, %v4570_v21 }
 0x7dd   :  { %v1937_v30 = vpop.f32.mrf.mxu1  ;;  %v1979_v44 = vpop.f32.mrf.mxu0 }
 0x7de   :  { %3185 = vpow2.f32 %v2563_v49  ;;  %v1984_v12 = vadd.f32 %v1937_v30, %v4569_v14  ;;  %v2565_v17 = vmul.f32 -1.442695, %v1997_v34  ;;  %v4572_v30 = vld [vmem:[#allocation9_spill] sm:$0xff] }
 0x7df   :  { %v2893_v13 = vpop.f32.mrf.mxu0  ;;  %v1939_v53 = vpop.f32.mrf.mxu1 }
 0x7e0   :  { %v2564_v16 = vmul.f32 -1.442695, %v1984_v12  ;;  %v1998_v29 = vadd.f32 %v1939_v53, %v3956_v31  ;;  %v2012_v31 = vadd.f32 %v3982_v9, %v1979_v44 }
 0x7e2   :  { %3187 = vpow2.f32 %v2564_v16  ;;  %v2566_v24 = vmul.f32 -1.442695, %v1998_v29 }
 0x7e3   :  { %3189 = vpow2.f32 %v2565_v17 }
 0x7eb   :  { %v3186_v36 = vpop.eup %3185 }
 0x7ec   :  { %v1991_v11 = vadd.f32 1.0, %v3186_v36 }
 0x7ee   :  { %3191 = vrcp.f32 %v1991_v11 }
 0x7ef   :  { %v3188_v37 = vpop.eup %3187  ;;  %3193 = vpow2.f32 %v2566_v24  ;;  %v4415_v24 = vld [vmem:[%s4517_s11] ss:$0 sm:$0xff] }
 0x7f0   :  { %v1992_v15 = vadd.f32 1.0, %v3188_v37  ;;  %v3190_v38 = vpop.eup %3189 }
 0x7f1   :  { %v2005_v42 = vadd.f32 1.0, %v3190_v38 }
 0x7f2   :  { %3195 = vrcp.f32 %v1992_v15 }
 0x7fb   :  { %v3192_v20 = vpop.eup %3191 }
 0x7fc   :  { %v2013_v50 = vmul.f32 %v3192_v20, %v2011_v47  ;;  %v3194_v52 = vpop.eup %3193  ;;  %v4577_v20 = vld [vmem:[#allocation12_spill] sm:$0xff] }
 0x7fd   :  { %v2006_v12 = vadd.f32 1.0, %v3194_v52 }
 0x7fe   :  { %v2015_v51 = vadd.f32 %v2013_v50, %v4571_v48 }
 0x7ff   :  { %v3196_v41 = vpop.eup %3195 }
 0x800   :  { %3197 = vtanh.f32 %v2015_v51  ;;  %v2014_v49 = vmul.f32 %v3196_v41, %v2012_v31  ;;  %v4578_v31 = vld [vmem:[#allocation14_spill] sm:$0xff] }
 0x801   :  { %3199 = vrcp.f32 %v2005_v42 }
 0x802   :  { %v2016_v14 = vadd.f32 %v2014_v49, %v4572_v30 }
 0x804   :  { %3201 = vtanh.f32 %v2016_v14 }
 0x805   :  { %3203 = vrcp.f32 %v2006_v12 }
 0x80d   :  { %v3198_v13 = vpop.eup %3197 }
 0x80e   :  { %v2019_v32 = vsub.f32 %v4307_v19, %v3198_v13  ;;  %v3200_v16 = vpop.eup %3199 }
 0x810   :  { %v2021_v21 = vmul.f32 %v3200_v16, %v2019_v32 }
 0x811   :  { %v3202_v34 = vpop.eup %3201 }
 0x812   :  { %v2020_v53 = vsub.f32 %v4309_v23, %v3202_v34  ;;  %v4368_v17 = vadd.f32 %v3198_v13, %v2021_v21  ;;  %v3204_v9 = vpop.eup %3203 }
 0x814   :  { %v2022_v44 = vmul.f32 %v3204_v9, %v2020_v53 }
 0x816   :  { %v4370_v29 = vadd.f32 %v3202_v34, %v2022_v44 }
 0x818   :  { %v2029_v36 = vpack.c.bf16 %v4370_v29, %v4368_v17 }
 0x81a   :  { %2063 = vmatmul.mubr.bf16.vlgmr.msra.gmra.mxu1 %v2029_v36  ;;  %2911 = vmatmul.mubr.bf16.vlgmr.msra.gmra.mxu0 %v2029_v36  ;;  %v3077_v36 = vld [vmem:[%s4518_s12 + $0x38] sm:$0xff]  }
 0x81b   :  { %2162 = vmatpush1.bf16.msra.mxu1 %v4104_v46  ;;  %2915 = vmatpush3.bf16.msra.mxu0 %v4110_v26  ;;  %v4573_v26 = vld [vmem:[#allocation22_spill] sm:$0xff] }
 0x81c   :  { %2163 = vmatprep.subr.bf16.mxu1 %v4116_v63  ;;  %2916 = vmatprep.subr.bf16.mxu0 %v4559_v35 }
 0x81d   :  { %2193 = vmatprep.mubr.bf16.mxu1 %v4560_v3  ;;  %2930 = vmatprep.mubr.msk.bf16.mxu0 %vm3275_vm4, %v4559_v35 }
 0x81f   :  { %2164 = vmatpush1.bf16.msra.mxu1 %v4182_v45  ;;  %2917 = vmatpush3.bf16.msra.mxu0 %v4188_v25 }
 0x820   :  { %2165 = vmatprep.subr.bf16.mxu1 %v4194_v7  ;;  %2918 = vmatprep.subr.bf16.mxu0 %v4559_v35 }
 0x823   :  { %2166 = vmatpush1.bf16.msra.mxu1 %v4201_v8  ;;  %2919 = vmatpush3.bf16.msra.mxu0 %v4207_v54 }
 0x824   :  { %2167 = vmatprep.subr.bf16.mxu1 %v4213_v55  ;;  %2920 = vmatprep.subr.bf16.mxu0 %v4559_v35  ;;  %v4574_v55 = vld [vmem:[#allocation24_spill] sm:$0xff] }
 0x827   :  { %2168 = vmatpush1.bf16.msra.mxu1 %v4220_v57  ;;  %2921 = vmatpush3.bf16.msra.mxu0 %v4226_v58 }
 0x828   :  { %2169 = vmatprep.subr.bf16.mxu1 %v4232_v60  ;;  %2922 = vmatprep.subr.bf16.mxu0 %v4559_v35 }
 0x82b   :  { %2170 = vmatpush1.bf16.msra.mxu1 %v4239_v61  ;;  %2923 = vmatpush3.bf16.msra.mxu0 %v4245_v62  ;;  %v4575_v61 = vld [vmem:[#allocation23_spill] sm:$0xff] }
 0x82c   :  { %2171 = vmatprep.subr.bf16.mxu1 %v4251_v0  ;;  %2924 = vmatprep.subr.bf16.mxu0 %v4559_v35 }
 0x82f   :  { %2172 = vmatpush1.bf16.msra.mxu1 %v4258_v1  ;;  %2925 = vmatpush3.bf16.msra.mxu0 %v4264_v2  ;;  %v4576_v2 = vld [vmem:[#allocation25_spill] sm:$0xff] }
 0x830   :  { %2173 = vmatprep.subr.bf16.mxu1 %v4270_v4  ;;  %2926 = vmatprep.subr.bf16.mxu0 %v4559_v35 }
 0x833   :  { %2174 = vmatpush1.bf16.msra.mxu1 %v4277_v5  ;;  %2927 = vmatpush3.bf16.msra.mxu0 %v4344_v28 }
 0x834   :  { %2175 = vmatprep.subr.bf16.mxu1 %v4284_v6  ;;  %2928 = vmatprep.subr.bf16.mxu0 %v4559_v35 }
 0x837   :  { %2176 = vmatpush1.bf16.msra.mxu1 %v4291_v10  ;;  %2929 = vmatpush3.bf16.msra.mxu0 %v4353_v43 }
 0x838   :  { %2934 = vmatprep.subr.bf16.mxu1 %v4559_v35 }
 0x8da   :  { %v2064_v3 = vpop.f32.mrf.mxu1  ;;  %v2107_v46 = vpop.f32.mrf.mxu0 }
 0x8db   :  { %v2114_v63 = vadd.f32 %v2064_v3, %v4573_v26  ;;  %v2142_v37 = vadd.f32 %v4415_v24, %v2107_v46  ;;  %v3078_v3 = vld [vmem:[%s4518_s12 + $0x30] sm:$0xff]   ;;  %v3079_v46 = vld [vmem:[%s4518_s12 + $0x28] sm:$0xff]   ;;  %v3080_v26 = vld [vmem:[%s4518_s12 + $0x20] sm:$0xff]  }
 0x8dc   :  { %v2066_v45 = vpop.f32.mrf.mxu1  ;;  %v2912_v25 = vpop.f32.mrf.mxu0 }
 0x8dd   :  { %v2567_v7 = vmul.f32 -1.442695, %v2114_v63  ;;  %v2128_v62 = vadd.f32 %v2066_v45, %v4575_v61  ;;  %v3081_v63 = vld [vmem:[%s4518_s12 + $0x18] sm:$0xff]   ;;  %v3082_v45 = vld [vmem:[%s4518_s12 + $0x10] sm:$0xff]   ;;  %v3083_v25 = vld [vmem:[%s4518_s12 + $0x8] sm:$0xff]  }
 0x8de   :  { %v2068_v8 = vpop.f32.mrf.mxu1  ;;  %v2110_v54 = vpop.f32.mrf.mxu0 }
 0x8df   :  { %3205 = vpow2.f32 %v2567_v7  ;;  %v2115_v57 = vadd.f32 %v2068_v8, %v4574_v55  ;;  %v2569_v1 = vmul.f32 -1.442695, %v2128_v62  ;;  %v2143_v48 = vadd.f32 %v4415_v24, %v2110_v54  ;;  %v3084_v7 = vld [vmem:[%s4518_s12] sm:$0xff]   ;;  %v4579_v55 = vld [vmem:[#allocation26_spill] sm:$0xff] }
 0x8e0   :  { %v2913_v58 = vpop.f32.mrf.mxu0  ;;  %v2070_v0 = vpop.f32.mrf.mxu1 }
 0x8e1   :  { %v2568_v60 = vmul.f32 -1.442695, %v2115_v57  ;;  %v2129_v4 = vadd.f32 %v2070_v0, %v4576_v2 }
 0x8e3   :  { %3207 = vpow2.f32 %v2568_v60  ;;  %v2570_v10 = vmul.f32 -1.442695, %v2129_v4 }
 0x8e4   :  { %3209 = vpow2.f32 %v2569_v1  ;;  %v4580_v1 = vld [vmem:[#allocation28_spill] sm:$0xff] }
 0x8ec   :  { %v3206_v5 = vpop.eup %3205 }
 0x8ed   :  { %v2122_v6 = vadd.f32 1.0, %v3206_v5 }
 0x8ef   :  { %3211 = vrcp.f32 %v2122_v6  ;;  %v4581_v6 = vld [vmem:[#allocation27_spill] sm:$0xff] }
 0x8f0   :  { %v3208_v28 = vpop.eup %3207  ;;  %3213 = vpow2.f32 %v2570_v10 }
 0x8f1   :  { %v2123_v43 = vadd.f32 1.0, %v3208_v28  ;;  %v3210_v11 = vpop.eup %3209 }
 0x8f2   :  { %v2136_v52 = vadd.f32 1.0, %v3210_v11 }
 0x8f3   :  { %3215 = vrcp.f32 %v2123_v43  ;;  %v4582_v43 = vld [vmem:[#allocation29_spill] sm:$0xff] }
 0x8fc   :  { %v3212_v15 = vpop.eup %3211 }
 0x8fd   :  { %v2144_v38 = vmul.f32 %v3212_v15, %v2142_v37  ;;  %v3214_v47 = vpop.eup %3213 }
 0x8fe   :  { %v2137_v49 = vadd.f32 1.0, %v3214_v47 }
 0x8ff   :  { %v2146_v50 = vadd.f32 %v2144_v38, %v4577_v20 }
 0x900   :  { %v3216_v51 = vpop.eup %3215 }
 0x901   :  { %3217 = vtanh.f32 %v2146_v50  ;;  %v2145_v42 = vmul.f32 %v3216_v51, %v2143_v48 }
 0x902   :  { %3219 = vrcp.f32 %v2136_v52 }
 0x903   :  { %v2147_v41 = vadd.f32 %v2145_v42, %v4578_v31  ;;  %v4583_v31 = vld [vmem:[#allocation11_spill] sm:$0xff] }
 0x905   :  { %3221 = vtanh.f32 %v2147_v41 }
 0x906   :  { %3223 = vrcp.f32 %v2137_v49 }
 0x90e   :  { %v3218_v30 = vpop.eup %3217 }
 0x90f   :  { %v2150_v14 = vsub.f32 %v4368_v17, %v3218_v30  ;;  %v3220_v12 = vpop.eup %3219 }
 0x911   :  { %v2152_v13 = vmul.f32 %v3220_v12, %v2150_v14 }
 0x912   :  { %v3222_v32 = vpop.eup %3221 }
 0x913   :  { %v2151_v16 = vsub.f32 %v4370_v29, %v3222_v32  ;;  %v4423_v21 = vadd.f32 %v3218_v30, %v2152_v13  ;;  %v3224_v34 = vpop.eup %3223  ;;  %v4584_v13 = vld [vmem:[#allocation13_spill] sm:$0xff] }
 0x915   :  { %v2153_v53 = vmul.f32 %v3224_v34, %v2151_v16  ;;  %v686_v34 = vpop.permute.xlu0 %685 }
 0x916   :  { %vm1370_vm5 = vcmp.eq.s32.totalorder %v686_v34, 1  ;;  %vm1501_vm7 = vcmp.eq.s32.totalorder %v686_v34, 2  ;;  %vm1632_vm9 = vcmp.eq.s32.totalorder %v686_v34, 3  ;;  %vm1763_vm11 = vcmp.eq.s32.totalorder %v686_v34, 4 }
 0x917   :  { %v4425_v9 = vadd.f32 %v3222_v32, %v2153_v53  ;;  %vm1894_vm13 = vcmp.eq.s32.totalorder %v686_v34, 5  ;;  %vm2025_vm15 = vcmp.eq.s32.totalorder %v686_v34, 6  ;;  %vm2156_vm1 = vcmp.eq.s32.totalorder %v686_v34, 7 }
 0x918   :  { %vm2287_vm3 = vcmp.eq.s32.totalorder %v686_v34, 8 }
 0x919   :  { %v2160_v44 = vpack.c.bf16 %v4425_v9, %v4423_v21  ;;  %v4470_v53 = vpop.permute.xlu0 %688 }
 0x91a   :  { %vm1371_vm6 = vcmp.eq.s32.totalorder %v4470_v53, 1  ;;  %vm1502_vm8 = vcmp.eq.s32.totalorder %v4470_v53, 2  ;;  %vm1633_vm10 = vcmp.eq.s32.totalorder %v4470_v53, 3  ;;  %vm1764_vm12 = vcmp.eq.s32.totalorder %v4470_v53, 4 }
 0x91b   :  { %2194 = vmatmul.mubr.bf16.vlgmr.msra.gmra.mxu1 %v2160_v44  ;;  %2931 = vmatmul.mubr.bf16.vlgmr.msra.gmra.mxu0 %v2160_v44  ;;  %vm1895_vm14 = vcmp.eq.s32.totalorder %v4470_v53, 5  ;;  %vm2026_vm0 = vcmp.eq.s32.totalorder %v4470_v53, 6  ;;  %vm2157_vm2 = vcmp.eq.s32.totalorder %v4470_v53, 7 }
 0x91c   :  { %2950 = vmatprep.mubr.msk.bf16.mxu1 %vm3275_vm4, %v4559_v35  ;;  %2935 = vmatpush3.bf16.msra.mxu1 %v3077_v36  ;;  %vm2288_vm4 = vcmp.eq.s32.totalorder %v4470_v53, 8 }
 0x91d   :  { %2936 = vmatprep.subr.bf16.mxu1 %v4559_v35 }
 0x920   :  { %2937 = vmatpush3.bf16.msra.mxu1 %v3078_v3  ;;  %v1372_v3 = vsel %vm1370_vm5, %v3993_v59, 0.0  ;;  %vm2404_vm5 = vcmp.gt.s32.totalorder %v686_v34, 0 }
 0x921   :  { %2938 = vmatprep.subr.bf16.mxu1 %v4559_v35 }
 0x924   :  { %2939 = vmatpush3.bf16.msra.mxu1 %v3079_v46  ;;  %v1373_v46 = vsel %vm1371_vm6, %v3995_v33, 0.0  ;;  %vm2405_vm6 = vcmp.gt.s32.totalorder %v4470_v53, 0 }
 0x925   :  { %2940 = vmatprep.subr.bf16.mxu1 %v4559_v35 }
 0x928   :  { %2941 = vmatpush3.bf16.msra.mxu1 %v3080_v26  ;;  %v1503_v26 = vsel %vm1501_vm7, %v4044_v40, %v1372_v3 }
 0x929   :  { %2942 = vmatprep.subr.bf16.mxu1 %v4559_v35 }
 0x92c   :  { %2943 = vmatpush3.bf16.msra.mxu1 %v3081_v63 }
 0x92d   :  { %2944 = vmatprep.subr.bf16.mxu1 %v4559_v35 }
 0x930   :  { %2945 = vmatpush3.bf16.msra.mxu1 %v3082_v45 }
 0x931   :  { %2946 = vmatprep.subr.bf16.mxu1 %v4559_v35 }
 0x934   :  { %2947 = vmatpush3.bf16.msra.mxu1 %v3083_v25  ;;  %v1504_v25 = vsel %vm1502_vm8, %v4046_v18, %v1373_v46 }
 0x935   :  { %2948 = vmatprep.subr.bf16.mxu1 %v4559_v35  ;;  %v1635_v40 = vsel %vm1633_vm10, %v4097_v27, %v1504_v25 }
 0x936   :  { %v1766_v18 = vsel %vm1764_vm12, %v4168_v39, %v1635_v40 }
 0x938   :  { %2949 = vmatpush3.bf16.msra.mxu1 %v3084_v7  ;;  %v1634_v7 = vsel %vm1632_vm9, %v4095_v22, %v1503_v26 }
 0x9db   :  { %v2195_v8 = vpop.f32.mrf.mxu1  ;;  %v2238_v54 = vpop.f32.mrf.mxu0 }
 0x9dc   :  { %v2245_v57 = vadd.f32 %v2195_v8, %v4579_v55  ;;  %v2273_v52 = vadd.f32 %v4415_v24, %v2238_v54  ;;  %v1765_v54 = vsel %vm1763_vm11, %v4166_v56, %v1634_v7 }
 0x9dd   :  { %v2197_v58 = vpop.f32.mrf.mxu1  ;;  %v2932_v60 = vpop.f32.mrf.mxu0  ;;  %v1896_v55 = vsel %vm1894_vm13, %v4307_v19, %v1765_v54  ;;  %v2575_v19 = vld [vmem:[%s4519_s13] ss:$0 sm:$0xff] }
 0x9de   :  { %v2571_v61 = vmul.f32 -1.442695, %v2245_v57  ;;  %v2259_v10 = vadd.f32 %v2197_v58, %v4581_v6  ;;  %v1897_v57 = vsel %vm1895_vm14, %v4309_v23, %v1766_v18  ;;  %v2027_v58 = vsel %vm2025_vm15, %v4368_v17, %v1896_v55  ;;  %v4586_v6 = vld [vmem:[#allocation5_spill] sm:$0xff] }
 0x9df   :  { %v2199_v62 = vpop.f32.mrf.mxu1  ;;  %v2241_v0 = vpop.f32.mrf.mxu0  ;;  %v2028_v60 = vsel %vm2026_vm0, %v4370_v29, %v1897_v57  ;;  %v2158_v56 = vsel %vm2156_vm1, %v4423_v21, %v2027_v58 }
 0x9e0   :  { %3225 = vpow2.f32 %v2571_v61  ;;  %v2246_v2 = vadd.f32 %v2199_v62, %v4580_v1  ;;  %v2573_v35 = vmul.f32 -1.442695, %v2259_v10  ;;  %v2274_v30 = vadd.f32 %v4415_v24, %v2241_v0  ;;  %v4585_v1 = vld [vmem:[#allocation4_spill] sm:$0xff] }
 0x9e1   :  { %v2933_v4 = vpop.f32.mrf.mxu0  ;;  %v2201_v28 = vpop.f32.mrf.mxu1  ;;  %v2159_v61 = vsel %vm2157_vm2, %v4425_v9, %v2028_v60  ;;  %v2406_v29 = vmul.f32 0.3, %v4585_v1  ;;  %v2407_v10 = vmul.f32 0.3, %v4586_v6 }
 0x9e2   :  { %v2572_v5 = vmul.f32 -1.442695, %v2246_v2  ;;  %v2260_v11 = vadd.f32 %v2201_v28, %v4582_v43 }
 0x9e4   :  { %3227 = vpow2.f32 %v2572_v5  ;;  %v2574_v38 = vmul.f32 -1.442695, %v2260_v11 }
 0x9e5   :  { %3229 = vpow2.f32 %v2573_v35 }
 0x9ed   :  { %v3226_v37 = vpop.eup %3225 }
 0x9ee   :  { %v2253_v15 = vadd.f32 1.0, %v3226_v37 }
 0x9f0   :  { %3231 = vrcp.f32 %v2253_v15 }
 0x9f1   :  { %v3228_v47 = vpop.eup %3227  ;;  %3233 = vpow2.f32 %v2574_v38 }
 0x9f2   :  { %v2254_v20 = vadd.f32 1.0, %v3228_v47  ;;  %v3230_v50 = vpop.eup %3229 }
 0x9f3   :  { %v2267_v49 = vadd.f32 1.0, %v3230_v50 }
 0x9f4   :  { %3235 = vrcp.f32 %v2254_v20 }
 0x9fd   :  { %v3232_v48 = vpop.eup %3231 }
 0x9fe   :  { %v2275_v51 = vmul.f32 %v3232_v48, %v2273_v52  ;;  %v3234_v42 = vpop.eup %3233 }
 0x9ff   :  { %v2268_v16 = vadd.f32 1.0, %v3234_v42 }
 0xa00   :  { %v2277_v41 = vadd.f32 %v2275_v51, %v4583_v31 }
 0xa01   :  { %v3236_v14 = vpop.eup %3235 }
 0xa02   :  { %3237 = vtanh.f32 %v2277_v41  ;;  %v2276_v12 = vmul.f32 %v3236_v14, %v2274_v30 }
 0xa03   :  { %3239 = vrcp.f32 %v2267_v49 }
 0xa04   :  { %v2278_v32 = vadd.f32 %v2276_v12, %v4584_v13 }
 0xa06   :  { %3241 = vtanh.f32 %v2278_v32 }
 0xa07   :  { %3243 = vrcp.f32 %v2268_v16 }
 0xa0f   :  { %v3238_v44 = vpop.eup %3237 }
 0xa10   :  { %v2281_v24 = vsub.f32 %v4423_v21, %v3238_v44  ;;  %v3240_v36 = vpop.eup %3239 }
 0xa12   :  { %v2283_v63 = vmul.f32 %v3240_v36, %v2281_v24 }
 0xa13   :  { %v3242_v45 = vpop.eup %3241 }
 0xa14   :  { %v2282_v59 = vsub.f32 %v4425_v9, %v3242_v45  ;;  %v2285_v8 = vadd.f32 %v3238_v44, %v2283_v63  ;;  %v3244_v33 = vpop.eup %3243 }
 0xa16   :  { %v2284_v22 = vmul.f32 %v3244_v33, %v2282_v59  ;;  %v2289_v39 = vsel %vm2287_vm3, %v2285_v8, %v2158_v56 }
 0xa18   :  { %v2286_v27 = vadd.f32 %v3242_v45, %v2284_v22 }
 0xa1a   :  { %v2290_v62 = vsel %vm2288_vm4, %v2286_v27, %v2159_v61 }
 0xa1b   :  { %v2291_v0 = vpack.c.bf16 %v2290_v62, %v2289_v39 }
 0xa1d   :  { %2951 = vmatmul.mubr.bf16.vlgmr.msra.gmra.mxu1 %v2291_v0 }
 0xadd   :  { %v2397_v23 = vpop.f32.mrf.mxu1 }
 0xade   :  { %v2398_v17 = vadd.f32 %v2575_v19, %v2397_v23 }
 0xadf   :  { %v2952_v2 = vpop.f32.mrf.mxu1 }
 0xae0   :  { %v2408_v4 = vmul.f32 0.7, %v2398_v17 }
 0xae1   :  { %v2400_v21 = vpop.f32.mrf.mxu1 }
 0xae2   :  { %v2410_v5 = vadd.f32 %v2408_v4, %v2406_v29  ;;  %v2401_v9 = vadd.f32 %v2575_v19, %v2400_v21 }
 0xae3   :  { %v2953_v28 = vpop.f32.mrf.mxu1 }
 0xae4   :  { %v2412_v35 = vsel %vm2404_vm5, %v2410_v5, %v4585_v1  ;;  %v2409_v43 = vmul.f32 0.7, %v2401_v9 }
 0xae5   :  { %2414 = vst [vmem:[%s4524_s14] sm:$0xff] %v2412_v35 }
 0xae6   :  { %v2411_v11 = vadd.f32 %v2409_v43, %v2407_v10 }
 0xae8   :  { %v2413_v37 = vsel %vm2405_vm6, %v2411_v11, %v4586_v6 }
 0xae9   :  { %2415 = vst [vmem:[%s4524_s14 + $0x8] sm:$0xff] %v2413_v37 }
 0xaea PF:  {}

</bundles_post_ra>
